<compile_context>
chip_gen: v5e
topology: v5e:2x2
jax: 0.10.0
libtpu: 0.0.40
codegen_flags: <defaults>
</compile_context>

<pallas_src>
import functools

import jax
import jax.numpy as jnp
from jax import lax
from jax.experimental import pallas as pl
from jax.experimental.pallas import tpu as pltpu

_BN_EPS = 1e-5


def _softplus(x):
    # matches torch.nn.Softplus(beta=1, threshold=20)
    return jnp.where(x > 20.0, x, jnp.log1p(jnp.exp(jnp.minimum(x, 20.0))))


def _batchnorm_train(x):
    # BatchNorm1d(affine=False), training mode: per-batch (axis=0) stats, biased variance.
    m = jnp.mean(x, axis=0, keepdims=True)
    v = jnp.mean((x - m) * (x - m), axis=0, keepdims=True)
    return (x - m) / jnp.sqrt(v + _BN_EPS)


def _softmax_rows(x):
    x = x - jnp.max(x, axis=-1, keepdims=True)
    e = jnp.exp(x)
    return e * pl.reciprocal(jnp.sum(e, axis=-1, keepdims=True), approx=False)


def _pick_tile(n, candidates):
    # largest candidate tile that divides n and gives >= 2 grid steps, else any divisor, else n.
    for c in candidates:
        if n % c == 0 and n // c >= 2:
            return c
    for c in candidates:
        if n % c == 0:
            return c
    return n


# --------------------------- stage 1: encoder / theta / KL ---------------------------
def _encoder_kernel(num_topic,
                    x_ref, w0_ref, b0_ref, w1_ref, b1_ref, wms_ref, bms_ref,
                    pmean_ref, pvar_ref, eps_ref,
                    theta_ref, kl_ref, acc_ref):
    v = pl.program_id(0)

    @pl.when(v == 0)
    def _():
        acc_ref[...] = jnp.zeros_like(acc_ref)

    # x @ W0 accumulated over vocab tiles (bf16 operands, f32 accumulation on the MXU).
    acc_ref[...] += jnp.dot(x_ref[...].astype(jnp.bfloat16), w0_ref[...],
                            preferred_element_type=jnp.float32)

    @pl.when(v == pl.num_programs(0) - 1)
    def _():
        h = _softplus(acc_ref[...] + b0_ref[...])
        h = _softplus(jnp.dot(h.astype(jnp.bfloat16), w1_ref[...],
                              preferred_element_type=jnp.float32) + b1_ref[...])
        # TODO(synk): dropout_enc / drop_theta are identity here (eval-mode semantics).

        # Fused mu|log_sigma projection: a single (H, 2K) matmul (128 lanes for K=64).
        ms = jnp.dot(h.astype(jnp.bfloat16), wms_ref[...],
                     preferred_element_type=jnp.float32) + bms_ref[...]
        # BatchNorm is per-column, so BN of the fused block == BN(mu) | BN(log_sigma).
        ms = _batchnorm_train(ms)                              # (B, 2K): [mu | log_sigma]

        col = lax.broadcasted_iota(jnp.int32, ms.shape, 1)
        in_mu = col < num_topic                                # lanes [0, K)
        in_ls = col >= num_topic                               # lanes [K, 2K)

        # Align log_sigma under the mu lanes with an XLU lane rotation, compute std once;
        # its square is the posterior variance (one exp instead of two).
        swapped = pltpu.roll(ms, num_topic, 1)                 # (B, 2K): [log_sigma | mu]
        half_exp = jnp.exp(0.5 * swapped)                      # lanes [0,K) = std

        # reparameterize: mu + std * mean(eps); softmax over the (lane-padded) topic axis.
        z = jnp.where(in_mu, ms + half_exp * eps_ref[...], -jnp.inf)
        theta_ref[...] = _softmax_rows(z)                      # padded lanes are exactly 0

        # ---- KL (masked reductions in the padded 2K lane space) ----
        pvar_sp = _softplus(pvar_ref[...])                     # (1, 2K); pad lanes benign
        sigma = half_exp * half_exp                            # lanes [0,K) = exp(log_sigma)
        var_div = jnp.sum(jnp.where(in_mu, sigma / pvar_sp, 0.0), axis=1, keepdims=True)
        diff = pmean_ref[...] - ms
        diff_term = jnp.sum(jnp.where(in_mu, diff * diff / pvar_sp, 0.0),
                            axis=1, keepdims=True)
        prow = lax.broadcasted_iota(jnp.int32, pvar_sp.shape, 1)
        log_pvar_sum = jnp.sum(jnp.where(prow < num_topic, jnp.log(pvar_sp), 0.0))
        log_sig_sum = jnp.sum(jnp.where(in_ls, ms, 0.0), axis=1, keepdims=True)
        kl = 0.5 * (var_div + diff_term - float(num_topic) + (log_pvar_sum - log_sig_sum))
        # torch.sum(..., dim=-1).mean() on a (B,) tensor == sum over the batch.
        kl_ref[...] = jnp.broadcast_to(jnp.sum(kl), (1, 1))


# ------------------ stage 2: word_dist, batch-norm, online logsumexp -----------------
def _word_dist_stats_kernel(theta_ref, beta_ref, y_ref, lse_ref, m_sc, s_sc):
    v = pl.program_id(0)

    @pl.when(v == 0)
    def _():
        m_sc[...] = jnp.full_like(m_sc, -jnp.inf)
        s_sc[...] = jnp.zeros_like(s_sc)

    wd = jnp.dot(theta_ref[...].astype(jnp.bfloat16), beta_ref[...],
                 preferred_element_type=jnp.float32)           # (B, TV)
    y = _batchnorm_train(wd)                                   # per-column stats: tile-local
    y_ref[...] = y

    # softmax over dim=1 spans all V tiles -> online log-sum-exp accumulators.
    m_new = jnp.maximum(m_sc[...], jnp.max(y, axis=-1, keepdims=True))
    s_sc[...] = s_sc[...] * jnp.exp(m_sc[...] - m_new) + jnp.sum(
        jnp.exp(y - m_new), axis=-1, keepdims=True)
    m_sc[...] = m_new

    @pl.when(v == pl.num_programs(0) - 1)
    def _():
        lse_ref[...] = m_sc[...] + jnp.log(s_sc[...])


# -------------------------- stage 3: word_dist_loss and RL ---------------------------
def _word_dist_loss_kernel(y_ref, x_ref, lse_ref, wdl_ref, rl_ref, rl_sc):
    v = pl.program_id(0)

    @pl.when(v == 0)
    def _():
        rl_sc[...] = jnp.zeros_like(rl_sc)

    logp = y_ref[...] - lse_ref[...]      # exact log-softmax of the batch-normed logits
    wdl_ref[...] = jnp.exp(logp)
    # TODO(synk): reference computes log(softmax + 1e-10); the exact log-softmax identity
    # is used instead (saves a full (B,V) log; negligible numeric difference here).
    rl_sc[...] += -jnp.sum(x_ref[...] * logp, axis=-1, keepdims=True)

    @pl.when(v == pl.num_programs(0) - 1)
    def _():
        rl_ref[...] = jnp.broadcast_to(jnp.mean(rl_sc[...]), (1, 1))


# ------------------------- stage 4: x-independent softmax(beta) ----------------------
def _beta_softmax_kernel(beta_ref, out_ref):
    out_ref[...] = _softmax_rows(beta_ref[...])


@jax.jit
def prodlda_forward(x, params, eps_mean):
    B, V = x.shape
    K = params["beta"].shape[0]
    H0 = params["w0"].shape[1]
    H1 = params["w1"].shape[1]
    KP = 2 * K                                    # fused / lane-padded topic width
    TV = _pick_tile(V, (512, 256, 128))
    nv = V // TV
    f32 = jnp.float32
    bf16 = jnp.bfloat16

    # One-time parameter plumbing (XLA): fuse mu|sigma projection, pad K-wide tensors to
    # the lane-dense 2K layout, cast MXU operands to bf16.
    w0 = params["w0"].astype(bf16)
    w1 = params["w1"].astype(bf16)
    wms = jnp.concatenate([params["wmu"], params["wsig"]], axis=1).astype(bf16)   # (H, 2K)
    bms = jnp.concatenate([params["bmu"], params["bsig"]], axis=1)                # (1, 2K)
    pmean = jnp.pad(params["prior_mean"], ((0, 0), (0, KP - K)))
    pvar = jnp.pad(params["prior_var"], ((0, 0), (0, KP - K)), constant_values=1.0)
    eps_p = jnp.pad(eps_mean, ((0, 0), (0, KP - K)))
    beta_p = jnp.pad(params["beta"], ((0, KP - K), (0, 0))).astype(bf16)          # (2K, V)

    arb = pltpu.CompilerParams(dimension_semantics=("arbitrary",))

    # ---- stage 1 ----
    theta_pad, kl = pl.pallas_call(
        functools.partial(_encoder_kernel, K),
        out_shape=(jax.ShapeDtypeStruct((B, KP), f32),
                   jax.ShapeDtypeStruct((1, 1), f32)),
        grid=(nv,),
        in_specs=[
            pl.BlockSpec((B, TV), lambda v: (0, v)),
            pl.BlockSpec((TV, H0), lambda v: (v, 0)),
            pl.BlockSpec((1, H0), lambda v: (0, 0)),
            pl.BlockSpec((H0, H1), lambda v: (0, 0)),
            pl.BlockSpec((1, H1), lambda v: (0, 0)),
            pl.BlockSpec((H1, KP), lambda v: (0, 0)),
            pl.BlockSpec((1, KP), lambda v: (0, 0)),
            pl.BlockSpec((1, KP), lambda v: (0, 0)),
            pl.BlockSpec((1, KP), lambda v: (0, 0)),
            pl.BlockSpec((B, KP), lambda v: (0, 0)),
        ],
        out_specs=(pl.BlockSpec((B, KP), lambda v: (0, 0)),
                   pl.BlockSpec((1, 1), lambda v: (0, 0))),
        scratch_shapes=[pltpu.VMEM((B, H0), f32)],
        compiler_params=arb,
    )(x, w0, params["b0"], w1, params["b1"], wms, bms, pmean, pvar, eps_p)

    # ---- stage 2 ----
    y_bn, lse = pl.pallas_call(
        _word_dist_stats_kernel,
        out_shape=(jax.ShapeDtypeStruct((B, V), f32),
                   jax.ShapeDtypeStruct((B, 1), f32)),
        grid=(nv,),
        in_specs=[
            pl.BlockSpec((B, KP), lambda v: (0, 0)),
            pl.BlockSpec((KP, TV), lambda v: (0, v)),
        ],
        out_specs=(pl.BlockSpec((B, TV), lambda v: (0, v)),
                   pl.BlockSpec((B, 1), lambda v: (0, 0))),
        scratch_shapes=[pltpu.VMEM((B, 1), f32), pltpu.VMEM((B, 1), f32)],
        compiler_params=arb,
    )(theta_pad, beta_p)

    # ---- stage 3 ----
    wdl, rl = pl.pallas_call(
        _word_dist_loss_kernel,
        out_shape=(jax.ShapeDtypeStruct((B, V), f32),
                   jax.ShapeDtypeStruct((1, 1), f32)),
        grid=(nv,),
        in_specs=[
            pl.BlockSpec((B, TV), lambda v: (0, v)),
            pl.BlockSpec((B, TV), lambda v: (0, v)),
            pl.BlockSpec((B, 1), lambda v: (0, 0)),
        ],
        out_specs=(pl.BlockSpec((B, TV), lambda v: (0, v)),
                   pl.BlockSpec((1, 1), lambda v: (0, 0))),
        scratch_shapes=[pltpu.VMEM((B, 1), f32)],
        compiler_params=arb,
    )(y_bn, x, lse)

    # ---- stage 4: hoisted, x-independent softmax(beta), row-tiled and "parallel" ----
    TK = _pick_tile(K, (256, 128, 64, 32, 16, 8))
    beta_sm = pl.pallas_call(
        _beta_softmax_kernel,
        out_shape=jax.ShapeDtypeStruct((K, V), f32),
        grid=(K // TK,),
        in_specs=[pl.BlockSpec((TK, V), lambda k: (k, 0))],
        out_specs=pl.BlockSpec((TK, V), lambda k: (k, 0)),
        compiler_params=pltpu.CompilerParams(dimension_semantics=("parallel",)),
    )(params["beta"])

    theta = theta_pad[:, :K]      # drop zero-valued lane padding
    # Match the PyTorch return structure:
    # ([RL], [KL], [softmax(beta.t(), dim=0)], [word_dist_loss], [theta])
    return ([rl[0, 0]], [kl[0, 0]], [beta_sm.T], [wdl], [theta])


def init_params(key, voc_size, num_topic, hidden_sizes):
    ks = jax.random.split(key, 8)

    def lin(k, fan_in, fan_out):
        bound = 1.0 / jnp.sqrt(float(fan_in))
        kw, kb = jax.random.split(k)
        w = jax.random.uniform(kw, (fan_in, fan_out), jnp.float32, -bound, bound)
        b = jax.random.uniform(kb, (1, fan_out), jnp.float32, -bound, bound)
        return w, b

    w0, b0 = lin(ks[0], voc_size, hidden_sizes[0])
    w1, b1 = lin(ks[1], hidden_sizes[0], hidden_sizes[1])
    wmu, bmu = lin(ks[2], hidden_sizes[-1], num_topic)
    wsig, bsig = lin(ks[3], hidden_sizes[-1], num_topic)

    # xavier_uniform_ for beta (K, V)
    limit = jnp.sqrt(6.0 / (num_topic + voc_size))
    beta = jax.random.uniform(ks[4], (num_topic, voc_size), jnp.float32, -limit, limit)

    prior_mean = jnp.zeros((1, num_topic), jnp.float32)
    prior_var = jnp.full((1, num_topic), 1.0 - 1.0 / num_topic, jnp.float32)

    return dict(w0=w0, b0=b0, w1=w1, b1=b1, wmu=wmu, bmu=bmu,
                wsig=wsig, bsig=bsig, beta=beta,
                prior_mean=prior_mean, prior_var=prior_var)


if __name__ == "__main__":
    BATCH = 8
    VOC_SIZE = 256
    NUM_TOPIC = 64
    HIDDEN_SIZES = (128, 128)
    SAMPLE_NUM = 20

    root = jax.random.PRNGKey(0)
    k_params, k_x, k_eps = jax.random.split(root, 3)

    params = init_params(k_params, VOC_SIZE, NUM_TOPIC, HIDDEN_SIZES)
    # bag-of-words style non-negative input
    x = jax.random.uniform(k_x, (BATCH, VOC_SIZE), jnp.float32, 0.0, 3.0)

    # reparameterize eps: mean over the 20 samples (exact, since std is constant per sample)
    eps = jax.random.normal(k_eps, (SAMPLE_NUM, BATCH, NUM_TOPIC), jnp.float32)
    eps_mean = jnp.mean(eps, axis=0)

    (RL,), (KL,), (beta_sm,), (word_dist_loss,), (theta,) = prodlda_forward(x, params, eps_mean)
    jax.block_until_ready((RL, KL, beta_sm, word_dist_loss, theta))

    assert RL.shape == () and KL.shape == ()
    assert beta_sm.shape == (VOC_SIZE, NUM_TOPIC)
    assert word_dist_loss.shape == (BATCH, VOC_SIZE)
    assert theta.shape == (BATCH, NUM_TOPIC)
    assert bool(jnp.isfinite(RL)) and bool(jnp.isfinite(KL))
    assert bool(jnp.all(jnp.isfinite(word_dist_loss))) and bool(jnp.all(jnp.isfinite(theta)))
    # each theta row / word_dist row is a probability distribution
    assert bool(jnp.allclose(jnp.sum(theta, axis=1), 1.0, atol=1e-4))
    assert bool(jnp.allclose(jnp.sum(word_dist_loss, axis=1), 1.0, atol=1e-4))

    print("KERNEL_OK")
</pallas_src>

<mosaic_0001>
module attributes {stable_mosaic.version = 11 : i64} {
  func.func @_word_dist_stats_kernel(%arg0: i32, %arg1: memref<8x128xf32, #tpu.memory_space<vmem>>, %arg2: memref<128x128xbf16, #tpu.memory_space<vmem>>, %arg3: memref<8x128xf32, #tpu.memory_space<vmem>>, %arg4: memref<8x1xf32, #tpu.memory_space<vmem>>, %arg5: memref<8x1xf32, #tpu.memory_space<vmem>>, %arg6: memref<8x1xf32, #tpu.memory_space<vmem>>) attributes {dimension_semantics = [#tpu.dimension_semantics<arbitrary>], iteration_bounds = array<i64: 2>, scalar_prefetch = 0 : i64, scratch_operands = 2 : i64, tpu.core_type = #tpu.core_type<tc>, window_params = [{pipeline_mode = #tpu.pipeline_mode<synchronous>, transform_indices = @transform_0, window_bounds = array<i64: 8, 128>}, {transform_indices = @transform_1, window_bounds = array<i64: 128, 128>}, {transform_indices = @transform_2, window_bounds = array<i64: 8, 128>}, {pipeline_mode = #tpu.pipeline_mode<synchronous>, transform_indices = @transform_3, window_bounds = array<i64: 8, 1>}]} {
    %c0_i32 = arith.constant 0 : i32
    %0 = arith.cmpi eq, %arg0, %c0_i32 : i32
    %1 = arith.extui %0 : i1 to i32
    %c0_i32_0 = arith.constant 0 : i32
    %2 = arith.cmpi ne, %1, %c0_i32_0 : i32
    scf.if %2 {
      %cst_24 = arith.constant 0xFF800000 : f32
      %48 = vector.broadcast %cst_24 : f32 to vector<8x1xf32>
      %c0_25 = arith.constant 0 : index
      %c0_26 = arith.constant 0 : index
      %49 = vector.load %arg5[%c0_25, %c0_26] : memref<8x1xf32, #tpu.memory_space<vmem>>, vector<8x1xf32>
      tpu.vector_store %arg5[%c0_25, %c0_26], %48 {strides = array<i32>} : memref<8x1xf32, #tpu.memory_space<vmem>>, vector<8x1xf32>,
      %cst_27 = arith.constant 0.000000e+00 : f32
      %50 = vector.broadcast %cst_27 : f32 to vector<8x1xf32>
      %c0_28 = arith.constant 0 : index
      %c0_29 = arith.constant 0 : index
      %51 = vector.load %arg6[%c0_28, %c0_29] : memref<8x1xf32, #tpu.memory_space<vmem>>, vector<8x1xf32>
      tpu.vector_store %arg6[%c0_28, %c0_29], %50 {strides = array<i32>} : memref<8x1xf32, #tpu.memory_space<vmem>>, vector<8x1xf32>,
    } else {
    }
    %c0 = arith.constant 0 : index
    %c0_1 = arith.constant 0 : index
    %3 = vector.load %arg1[%c0, %c0_1] : memref<8x128xf32, #tpu.memory_space<vmem>>, vector<8x128xf32>
    %4 = arith.truncf %3 : vector<8x128xf32> to vector<8x128xbf16>
    %c0_2 = arith.constant 0 : index
    %c0_3 = arith.constant 0 : index
    %5 = vector.load %arg2[%c0_2, %c0_3] : memref<128x128xbf16, #tpu.memory_space<vmem>>, vector<128x128xbf16>
    %cst = arith.constant dense<0.000000e+00> : vector<8x128xf32>
    %6 = tpu.matmul %4, %5, %cst {dimension_numbers = #tpu.dot_dimension_numbers<[1], [0], [0], [1], [0, 0, 1, 1], [], []>} : vector<8x128xbf16>, vector<128x128xbf16>, vector<8x128xf32> -> vector<8x128xf32>
    %cst_4 = arith.constant dense<0.000000e+00> : vector<128xf32>
    %7 = vector.multi_reduction <add>, %6, %cst_4 [0] : vector<8x128xf32> to vector<128xf32>
    %8 = vector.shape_cast %7 : vector<128xf32> to vector<1x128xf32>
    %cst_5 = arith.constant 8.000000e+00 : f32
    %9 = vector.broadcast %cst_5 : f32 to vector<1x128xf32>
    %10 = arith.divf %8, %9 : vector<1x128xf32>
    %11 = vector.broadcast %10 : vector<1x128xf32> to vector<8x128xf32>
    %12 = arith.subf %6, %11 : vector<8x128xf32>
    %13 = vector.broadcast %10 : vector<1x128xf32> to vector<8x128xf32>
    %14 = arith.subf %6, %13 : vector<8x128xf32>
    %15 = arith.mulf %12, %14 : vector<8x128xf32>
    %cst_6 = arith.constant dense<0.000000e+00> : vector<128xf32>
    %16 = vector.multi_reduction <add>, %15, %cst_6 [0] : vector<8x128xf32> to vector<128xf32>
    %17 = vector.shape_cast %16 : vector<128xf32> to vector<1x128xf32>
    %cst_7 = arith.constant 8.000000e+00 : f32
    %18 = vector.broadcast %cst_7 : f32 to vector<1x128xf32>
    %19 = arith.divf %17, %18 : vector<1x128xf32>
    %20 = vector.broadcast %10 : vector<1x128xf32> to vector<8x128xf32>
    %21 = arith.subf %6, %20 : vector<8x128xf32>
    %cst_8 = arith.constant 9.99999974E-6 : f32
    %22 = vector.broadcast %cst_8 : f32 to vector<1x128xf32>
    %23 = arith.addf %19, %22 : vector<1x128xf32>
    %24 = math.sqrt %23 : vector<1x128xf32>
    %25 = vector.broadcast %24 : vector<1x128xf32> to vector<8x128xf32>
    %26 = arith.divf %21, %25 : vector<8x128xf32>
    %c0_9 = arith.constant 0 : index
    %c0_10 = arith.constant 0 : index
    %27 = vector.load %arg3[%c0_9, %c0_10] : memref<8x128xf32, #tpu.memory_space<vmem>>, vector<8x128xf32>
    tpu.vector_store %arg3[%c0_9, %c0_10], %26 {strides = array<i32>} : memref<8x128xf32, #tpu.memory_space<vmem>>, vector<8x128xf32>,
    %c0_11 = arith.constant 0 : index
    %c0_12 = arith.constant 0 : index
    %28 = vector.load %arg5[%c0_11, %c0_12] : memref<8x1xf32, #tpu.memory_space<vmem>>, vector<8x1xf32>
    %cst_13 = arith.constant dense<0xFF800000> : vector<8xf32>
    %29 = vector.multi_reduction <maximumf>, %26, %cst_13 [1] : vector<8x128xf32> to vector<8xf32>
    %30 = vector.shape_cast %29 : vector<8xf32> to vector<8x1xf32>
    %31 = arith.maximumf %28, %30 : vector<8x1xf32>
    %c0_14 = arith.constant 0 : index
    %c0_15 = arith.constant 0 : index
    %32 = vector.load %arg6[%c0_14, %c0_15] : memref<8x1xf32, #tpu.memory_space<vmem>>, vector<8x1xf32>
    %c0_16 = arith.constant 0 : index
    %c0_17 = arith.constant 0 : index
    %33 = vector.load %arg5[%c0_16, %c0_17] : memref<8x1xf32, #tpu.memory_space<vmem>>, vector<8x1xf32>
    %34 = arith.subf %33, %31 : vector<8x1xf32>
    %35 = math.exp %34 : vector<8x1xf32>
    %36 = arith.mulf %32, %35 : vector<8x1xf32>
    %37 = vector.broadcast %31 : vector<8x1xf32> to vector<8x128xf32>
    %38 = arith.subf %26, %37 : vector<8x128xf32>
    %39 = math.exp %38 : vector<8x128xf32>
    %cst_18 = arith.constant dense<0.000000e+00> : vector<8xf32>
    %40 = vector.multi_reduction <add>, %39, %cst_18 [1] : vector<8x128xf32> to vector<8xf32>
    %41 = vector.shape_cast %40 : vector<8xf32> to vector<8x1xf32>
    %42 = arith.addf %36, %41 : vector<8x1xf32>
    %c0_19 = arith.constant 0 : index
    %c0_20 = arith.constant 0 : index
    %43 = vector.load %arg6[%c0_19, %c0_20] : memref<8x1xf32, #tpu.memory_space<vmem>>, vector<8x1xf32>
    tpu.vector_store %arg6[%c0_19, %c0_20], %42 {strides = array<i32>} : memref<8x1xf32, #tpu.memory_space<vmem>>, vector<8x1xf32>,
    %c0_21 = arith.constant 0 : index
    %c0_22 = arith.constant 0 : index
    %44 = vector.load %arg5[%c0_21, %c0_22] : memref<8x1xf32, #tpu.memory_space<vmem>>, vector<8x1xf32>
    tpu.vector_store %arg5[%c0_21, %c0_22], %31 {strides = array<i32>} : memref<8x1xf32, #tpu.memory_space<vmem>>, vector<8x1xf32>,
    %c1_i32 = arith.constant 1 : i32
    %45 = arith.cmpi eq, %arg0, %c1_i32 : i32
    %46 = arith.extui %45 : i1 to i32
    %c0_i32_23 = arith.constant 0 : i32
    %47 = arith.cmpi ne, %46, %c0_i32_23 : i32
    scf.if %47 {
      %c0_24 = arith.constant 0 : index
      %c0_25 = arith.constant 0 : index
      %48 = vector.load %arg5[%c0_24, %c0_25] : memref<8x1xf32, #tpu.memory_space<vmem>>, vector<8x1xf32>
      %c0_26 = arith.constant 0 : index
      %c0_27 = arith.constant 0 : index
      %49 = vector.load %arg6[%c0_26, %c0_27] : memref<8x1xf32, #tpu.memory_space<vmem>>, vector<8x1xf32>
      %50 = math.log %49 : vector<8x1xf32>
      %51 = arith.addf %48, %50 : vector<8x1xf32>
      %c0_28 = arith.constant 0 : index
      %c0_29 = arith.constant 0 : index
      %52 = vector.load %arg4[%c0_28, %c0_29] : memref<8x1xf32, #tpu.memory_space<vmem>>, vector<8x1xf32>
      tpu.vector_store %arg4[%c0_28, %c0_29], %51 {strides = array<i32>} : memref<8x1xf32, #tpu.memory_space<vmem>>, vector<8x1xf32>,
    } else {
    }
    return
  }
  func.func @transform_0(%arg0: i32) -> (i32, i32) {
    %c0_i32 = arith.constant 0 : i32
    %c0_i32_0 = arith.constant 0 : i32
    %c0_i32_1 = arith.constant 0 : i32
    return %c0_i32, %c0_i32_0 : i32, i32
  }
  func.func @transform_1(%arg0: i32) -> (i32, i32) {
    %c0_i32 = arith.constant 0 : i32
    %c0_i32_0 = arith.constant 0 : i32
    return %c0_i32, %arg0 : i32, i32
  }
  func.func @transform_2(%arg0: i32) -> (i32, i32) {
    %c0_i32 = arith.constant 0 : i32
    %c0_i32_0 = arith.constant 0 : i32
    return %c0_i32, %arg0 : i32, i32
  }
  func.func @transform_3(%arg0: i32) -> (i32, i32) {
    %c0_i32 = arith.constant 0 : i32
    %c0_i32_0 = arith.constant 0 : i32
    %c0_i32_1 = arith.constant 0 : i32
    return %c0_i32, %c0_i32_0 : i32, i32
  }
}

module attributes {stable_mosaic.version = 11 : i64} {
  func.func @_beta_softmax_kernel(%arg0: i32, %arg1: memref<32x256xf32, #tpu.memory_space<vmem>>, %arg2: memref<32x256xf32, #tpu.memory_space<vmem>>) attributes {dimension_semantics = [#tpu.dimension_semantics<parallel>], iteration_bounds = array<i64: 2>, scalar_prefetch = 0 : i64, scratch_operands = 0 : i64, tpu.core_type = #tpu.core_type<tc>, window_params = [{transform_indices = @transform_0, window_bounds = array<i64: 32, 256>}, {transform_indices = @transform_1, window_bounds = array<i64: 32, 256>}]} {
    %c0 = arith.constant 0 : index
    %c0_0 = arith.constant 0 : index
    %0 = vector.load %arg1[%c0, %c0_0] : memref<32x256xf32, #tpu.memory_space<vmem>>, vector<32x256xf32>
    %cst = arith.constant dense<0xFF800000> : vector<32xf32>
    %1 = vector.multi_reduction <maximumf>, %0, %cst [1] : vector<32x256xf32> to vector<32xf32>
    %2 = vector.shape_cast %1 : vector<32xf32> to vector<32x1xf32>
    %3 = vector.broadcast %2 : vector<32x1xf32> to vector<32x256xf32>
    %4 = arith.subf %0, %3 : vector<32x256xf32>
    %5 = math.exp %4 : vector<32x256xf32>
    %cst_1 = arith.constant dense<0.000000e+00> : vector<32xf32>
    %6 = vector.multi_reduction <add>, %5, %cst_1 [1] : vector<32x256xf32> to vector<32xf32>
    %7 = vector.shape_cast %6 : vector<32xf32> to vector<32x1xf32>
    %8 = tpu.reciprocal %7 : vector<32x1xf32> -> vector<32x1xf32>
    %9 = vector.broadcast %8 : vector<32x1xf32> to vector<32x256xf32>
    %10 = arith.mulf %5, %9 : vector<32x256xf32>
    %c0_2 = arith.constant 0 : index
    %c0_3 = arith.constant 0 : index
    %11 = vector.load %arg2[%c0_2, %c0_3] : memref<32x256xf32, #tpu.memory_space<vmem>>, vector<32x256xf32>
    tpu.vector_store %arg2[%c0_2, %c0_3], %10 {strides = array<i32>} : memref<32x256xf32, #tpu.memory_space<vmem>>, vector<32x256xf32>,
    return
  }
  func.func @transform_0(%arg0: i32) -> (i32, i32) {
    %c0_i32 = arith.constant 0 : i32
    %c0_i32_0 = arith.constant 0 : i32
    return %arg0, %c0_i32 : i32, i32
  }
  func.func @transform_1(%arg0: i32) -> (i32, i32) {
    %c0_i32 = arith.constant 0 : i32
    %c0_i32_0 = arith.constant 0 : i32
    return %arg0, %c0_i32 : i32, i32
  }
}

module attributes {stable_mosaic.version = 11 : i64} {
  func.func @_word_dist_loss_kernel(%arg0: i32, %arg1: memref<8x128xf32, #tpu.memory_space<vmem>>, %arg2: memref<8x128xf32, #tpu.memory_space<vmem>>, %arg3: memref<8x1xf32, #tpu.memory_space<vmem>>, %arg4: memref<8x128xf32, #tpu.memory_space<vmem>>, %arg5: memref<1x1xf32, #tpu.memory_space<vmem>>, %arg6: memref<8x1xf32, #tpu.memory_space<vmem>>) attributes {dimension_semantics = [#tpu.dimension_semantics<arbitrary>], iteration_bounds = array<i64: 2>, scalar_prefetch = 0 : i64, scratch_operands = 1 : i64, tpu.core_type = #tpu.core_type<tc>, window_params = [{transform_indices = @transform_0, window_bounds = array<i64: 8, 128>}, {transform_indices = @transform_1, window_bounds = array<i64: 8, 128>}, {pipeline_mode = #tpu.pipeline_mode<synchronous>, transform_indices = @transform_2, window_bounds = array<i64: 8, 1>}, {transform_indices = @transform_3, window_bounds = array<i64: 8, 128>}, {pipeline_mode = #tpu.pipeline_mode<synchronous>, transform_indices = @transform_4, window_bounds = array<i64: 1, 1>}]} {
    %c0_i32 = arith.constant 0 : i32
    %0 = arith.cmpi eq, %arg0, %c0_i32 : i32
    %1 = arith.extui %0 : i1 to i32
    %c0_i32_0 = arith.constant 0 : i32
    %2 = arith.cmpi ne, %1, %c0_i32_0 : i32
    scf.if %2 {
      %cst_14 = arith.constant 0.000000e+00 : f32
      %21 = vector.broadcast %cst_14 : f32 to vector<8x1xf32>
      %c0_15 = arith.constant 0 : index
      %c0_16 = arith.constant 0 : index
      %22 = vector.load %arg6[%c0_15, %c0_16] : memref<8x1xf32, #tpu.memory_space<vmem>>, vector<8x1xf32>
      tpu.vector_store %arg6[%c0_15, %c0_16], %21 {strides = array<i32>} : memref<8x1xf32, #tpu.memory_space<vmem>>, vector<8x1xf32>,
    } else {
    }
    %c0 = arith.constant 0 : index
    %c0_1 = arith.constant 0 : index
    %3 = vector.load %arg1[%c0, %c0_1] : memref<8x128xf32, #tpu.memory_space<vmem>>, vector<8x128xf32>
    %c0_2 = arith.constant 0 : index
    %c0_3 = arith.constant 0 : index
    %4 = vector.load %arg3[%c0_2, %c0_3] : memref<8x1xf32, #tpu.memory_space<vmem>>, vector<8x1xf32>
    %5 = vector.broadcast %4 : vector<8x1xf32> to vector<8x128xf32>
    %6 = arith.subf %3, %5 : vector<8x128xf32>
    %7 = math.exp %6 : vector<8x128xf32>
    %c0_4 = arith.constant 0 : index
    %c0_5 = arith.constant 0 : index
    %8 = vector.load %arg4[%c0_4, %c0_5] : memref<8x128xf32, #tpu.memory_space<vmem>>, vector<8x128xf32>
    tpu.vector_store %arg4[%c0_4, %c0_5], %7 {strides = array<i32>} : memref<8x128xf32, #tpu.memory_space<vmem>>, vector<8x128xf32>,
    %c0_6 = arith.constant 0 : index
    %c0_7 = arith.constant 0 : index
    %9 = vector.load %arg6[%c0_6, %c0_7] : memref<8x1xf32, #tpu.memory_space<vmem>>, vector<8x1xf32>
    %c0_8 = arith.constant 0 : index
    %c0_9 = arith.constant 0 : index
    %10 = vector.load %arg2[%c0_8, %c0_9] : memref<8x128xf32, #tpu.memory_space<vmem>>, vector<8x128xf32>
    %11 = arith.mulf %10, %6 : vector<8x128xf32>
    %cst = arith.constant dense<0.000000e+00> : vector<8xf32>
    %12 = vector.multi_reduction <add>, %11, %cst [1] : vector<8x128xf32> to vector<8xf32>
    %13 = vector.shape_cast %12 : vector<8xf32> to vector<8x1xf32>
    %cst_10 = arith.constant 0.000000e+00 : f32
    %14 = vector.broadcast %cst_10 : f32 to vector<8x1xf32>
    %15 = arith.subf %14, %13 : vector<8x1xf32>
    %16 = arith.addf %9, %15 : vector<8x1xf32>
    %c0_11 = arith.constant 0 : index
    %c0_12 = arith.constant 0 : index
    %17 = vector.load %arg6[%c0_11, %c0_12] : memref<8x1xf32, #tpu.memory_space<vmem>>, vector<8x1xf32>
    tpu.vector_store %arg6[%c0_11, %c0_12], %16 {strides = array<i32>} : memref<8x1xf32, #tpu.memory_space<vmem>>, vector<8x1xf32>,
    %c1_i32 = arith.constant 1 : i32
    %18 = arith.cmpi eq, %arg0, %c1_i32 : i32
    %19 = arith.extui %18 : i1 to i32
    %c0_i32_13 = arith.constant 0 : i32
    %20 = arith.cmpi ne, %19, %c0_i32_13 : i32
    scf.if %20 {
      %c0_14 = arith.constant 0 : index
      %c0_15 = arith.constant 0 : index
      %21 = vector.load %arg6[%c0_14, %c0_15] : memref<8x1xf32, #tpu.memory_space<vmem>>, vector<8x1xf32>
      %22 = vector.shape_cast %21 : vector<8x1xf32> to vector<1x8x1xf32>
      %cst_16 = arith.constant dense<0.000000e+00> : vector<1xf32>
      %23 = vector.multi_reduction <add>, %22, %cst_16 [1, 2] : vector<1x8x1xf32> to vector<1xf32>
      %24 = vector.shape_cast %23 : vector<1xf32> to vector<1x1x1xf32>
      %25 = vector.extract %24[0, 0, 0] : f32 from vector<1x1x1xf32>
      %cst_17 = arith.constant 8.000000e+00 : f32
      %26 = arith.divf %25, %cst_17 : f32
      %27 = vector.broadcast %26 : f32 to vector<1x1xf32>
      %c0_18 = arith.constant 0 : index
      %c0_19 = arith.constant 0 : index
      %28 = vector.load %arg5[%c0_18, %c0_19] : memref<1x1xf32, #tpu.memory_space<vmem>>, vector<1x1xf32>
      tpu.vector_store %arg5[%c0_18, %c0_19], %27 {strides = array<i32>} : memref<1x1xf32, #tpu.memory_space<vmem>>, vector<1x1xf32>,
    } else {
    }
    return
  }
  func.func @transform_0(%arg0: i32) -> (i32, i32) {
    %c0_i32 = arith.constant 0 : i32
    %c0_i32_0 = arith.constant 0 : i32
    return %c0_i32, %arg0 : i32, i32
  }
  func.func @transform_1(%arg0: i32) -> (i32, i32) {
    %c0_i32 = arith.constant 0 : i32
    %c0_i32_0 = arith.constant 0 : i32
    return %c0_i32, %arg0 : i32, i32
  }
  func.func @transform_2(%arg0: i32) -> (i32, i32) {
    %c0_i32 = arith.constant 0 : i32
    %c0_i32_0 = arith.constant 0 : i32
    %c0_i32_1 = arith.constant 0 : i32
    return %c0_i32, %c0_i32_0 : i32, i32
  }
  func.func @transform_3(%arg0: i32) -> (i32, i32) {
    %c0_i32 = arith.constant 0 : i32
    %c0_i32_0 = arith.constant 0 : i32
    return %c0_i32, %arg0 : i32, i32
  }
  func.func @transform_4(%arg0: i32) -> (i32, i32) {
    %c0_i32 = arith.constant 0 : i32
    %c0_i32_0 = arith.constant 0 : i32
    %c0_i32_1 = arith.constant 0 : i32
    return %c0_i32, %c0_i32_0 : i32, i32
  }
}

module attributes {stable_mosaic.version = 11 : i64} {
  func.func @_encoder_kernel(%arg0: i32, %arg1: memref<8x128xf32, #tpu.memory_space<vmem>>, %arg2: memref<128x128xbf16, #tpu.memory_space<vmem>>, %arg3: memref<1x128xf32, #tpu.memory_space<vmem>>, %arg4: memref<128x128xbf16, #tpu.memory_space<vmem>>, %arg5: memref<1x128xf32, #tpu.memory_space<vmem>>, %arg6: memref<128x128xbf16, #tpu.memory_space<vmem>>, %arg7: memref<1x128xf32, #tpu.memory_space<vmem>>, %arg8: memref<1x128xf32, #tpu.memory_space<vmem>>, %arg9: memref<1x128xf32, #tpu.memory_space<vmem>>, %arg10: memref<8x128xf32, #tpu.memory_space<vmem>>, %arg11: memref<8x128xf32, #tpu.memory_space<vmem>>, %arg12: memref<1x1xf32, #tpu.memory_space<vmem>>, %arg13: memref<8x128xf32, #tpu.memory_space<vmem>>) attributes {dimension_semantics = [#tpu.dimension_semantics<arbitrary>], iteration_bounds = array<i64: 2>, scalar_prefetch = 0 : i64, scratch_operands = 1 : i64, tpu.core_type = #tpu.core_type<tc>, window_params = [{transform_indices = @transform_0, window_bounds = array<i64: 8, 128>}, {transform_indices = @transform_1, window_bounds = array<i64: 128, 128>}, {pipeline_mode = #tpu.pipeline_mode<synchronous>, transform_indices = @transform_2, window_bounds = array<i64: 1, 128>}, {pipeline_mode = #tpu.pipeline_mode<synchronous>, transform_indices = @transform_3, window_bounds = array<i64: 128, 128>}, {pipeline_mode = #tpu.pipeline_mode<synchronous>, transform_indices = @transform_4, window_bounds = array<i64: 1, 128>}, {pipeline_mode = #tpu.pipeline_mode<synchronous>, transform_indices = @transform_5, window_bounds = array<i64: 128, 128>}, {pipeline_mode = #tpu.pipeline_mode<synchronous>, transform_indices = @transform_6, window_bounds = array<i64: 1, 128>}, {pipeline_mode = #tpu.pipeline_mode<synchronous>, transform_indices = @transform_7, window_bounds = array<i64: 1, 128>}, {pipeline_mode = #tpu.pipeline_mode<synchronous>, transform_indices = @transform_8, window_bounds = array<i64: 1, 128>}, {pipeline_mode = #tpu.pipeline_mode<synchronous>, transform_indices = @transform_9, window_bounds = array<i64: 8, 128>}, {pipeline_mode = #tpu.pipeline_mode<synchronous>, transform_indices = @transform_10, window_bounds = array<i64: 8, 128>}, {pipeline_mode = #tpu.pipeline_mode<synchronous>, transform_indices = @transform_11, window_bounds = array<i64: 1, 1>}]} {
    %c0_i32 = arith.constant 0 : i32
    %0 = arith.cmpi eq, %arg0, %c0_i32 : i32
    %1 = arith.extui %0 : i1 to i32
    %c0_i32_0 = arith.constant 0 : i32
    %2 = arith.cmpi ne, %1, %c0_i32_0 : i32
    scf.if %2 {
      %cst_9 = arith.constant 0.000000e+00 : f32
      %13 = vector.broadcast %cst_9 : f32 to vector<8x128xf32>
      %c0_10 = arith.constant 0 : index
      %c0_11 = arith.constant 0 : index
      %14 = vector.load %arg13[%c0_10, %c0_11] : memref<8x128xf32, #tpu.memory_space<vmem>>, vector<8x128xf32>
      tpu.vector_store %arg13[%c0_10, %c0_11], %13 {strides = array<i32>} : memref<8x128xf32, #tpu.memory_space<vmem>>, vector<8x128xf32>,
    } else {
    }
    %c0 = arith.constant 0 : index
    %c0_1 = arith.constant 0 : index
    %3 = vector.load %arg13[%c0, %c0_1] : memref<8x128xf32, #tpu.memory_space<vmem>>, vector<8x128xf32>
    %c0_2 = arith.constant 0 : index
    %c0_3 = arith.constant 0 : index
    %4 = vector.load %arg1[%c0_2, %c0_3] : memref<8x128xf32, #tpu.memory_space<vmem>>, vector<8x128xf32>
    %5 = arith.truncf %4 : vector<8x128xf32> to vector<8x128xbf16>
    %c0_4 = arith.constant 0 : index
    %c0_5 = arith.constant 0 : index
    %6 = vector.load %arg2[%c0_4, %c0_5] : memref<128x128xbf16, #tpu.memory_space<vmem>>, vector<128x128xbf16>
    %cst = arith.constant dense<0.000000e+00> : vector<8x128xf32>
    %7 = tpu.matmul %5, %6, %cst {dimension_numbers = #tpu.dot_dimension_numbers<[1], [0], [0], [1], [0, 0, 1, 1], [], []>} : vector<8x128xbf16>, vector<128x128xbf16>, vector<8x128xf32> -> vector<8x128xf32>
    %8 = arith.addf %3, %7 : vector<8x128xf32>
    %c0_6 = arith.constant 0 : index
    %c0_7 = arith.constant 0 : index
    %9 = vector.load %arg13[%c0_6, %c0_7] : memref<8x128xf32, #tpu.memory_space<vmem>>, vector<8x128xf32>
    tpu.vector_store %arg13[%c0_6, %c0_7], %8 {strides = array<i32>} : memref<8x128xf32, #tpu.memory_space<vmem>>, vector<8x128xf32>,
    %c1_i32 = arith.constant 1 : i32
    %10 = arith.cmpi eq, %arg0, %c1_i32 : i32
    %11 = arith.extui %10 : i1 to i32
    %c0_i32_8 = arith.constant 0 : i32
    %12 = arith.cmpi ne, %11, %c0_i32_8 : i32
    scf.if %12 {
      %c0_9 = arith.constant 0 : index
      %c0_10 = arith.constant 0 : index
      %13 = vector.load %arg13[%c0_9, %c0_10] : memref<8x128xf32, #tpu.memory_space<vmem>>, vector<8x128xf32>
      %c0_11 = arith.constant 0 : index
      %c0_12 = arith.constant 0 : index
      %14 = vector.load %arg3[%c0_11, %c0_12] : memref<1x128xf32, #tpu.memory_space<vmem>>, vector<1x128xf32>
      %15 = vector.broadcast %14 : vector<1x128xf32> to vector<8x128xf32>
      %16 = arith.addf %13, %15 : vector<8x128xf32>
      %cst_13 = arith.constant 2.000000e+01 : f32
      %17 = vector.broadcast %cst_13 : f32 to vector<8x128xf32>
      %18 = arith.cmpf ogt, %16, %17 : vector<8x128xf32>
      %cst_14 = arith.constant 2.000000e+01 : f32
      %19 = vector.broadcast %cst_14 : f32 to vector<8x128xf32>
      %20 = arith.minimumf %16, %19 : vector<8x128xf32>
      %21 = math.exp %20 : vector<8x128xf32>
      %22 = math.log1p %21 : vector<8x128xf32>
      %23 = arith.select %18, %16, %22 : vector<8x128xi1>, vector<8x128xf32>
      %24 = arith.truncf %23 : vector<8x128xf32> to vector<8x128xbf16>
      %c0_15 = arith.constant 0 : index
      %c0_16 = arith.constant 0 : index
      %25 = vector.load %arg4[%c0_15, %c0_16] : memref<128x128xbf16, #tpu.memory_space<vmem>>, vector<128x128xbf16>
      %cst_17 = arith.constant dense<0.000000e+00> : vector<8x128xf32>
      %26 = tpu.matmul %24, %25, %cst_17 {dimension_numbers = #tpu.dot_dimension_numbers<[1], [0], [0], [1], [0, 0, 1, 1], [], []>} : vector<8x128xbf16>, vector<128x128xbf16>, vector<8x128xf32> -> vector<8x128xf32>
      %c0_18 = arith.constant 0 : index
      %c0_19 = arith.constant 0 : index
      %27 = vector.load %arg5[%c0_18, %c0_19] : memref<1x128xf32, #tpu.memory_space<vmem>>, vector<1x128xf32>
      %28 = vector.broadcast %27 : vector<1x128xf32> to vector<8x128xf32>
      %29 = arith.addf %26, %28 : vector<8x128xf32>
      %cst_20 = arith.constant 2.000000e+01 : f32
      %30 = vector.broadcast %cst_20 : f32 to vector<8x128xf32>
      %31 = arith.cmpf ogt, %29, %30 : vector<8x128xf32>
      %cst_21 = arith.constant 2.000000e+01 : f32
      %32 = vector.broadcast %cst_21 : f32 to vector<8x128xf32>
      %33 = arith.minimumf %29, %32 : vector<8x128xf32>
      %34 = math.exp %33 : vector<8x128xf32>
      %35 = math.log1p %34 : vector<8x128xf32>
      %36 = arith.select %31, %29, %35 : vector<8x128xi1>, vector<8x128xf32>
      %37 = arith.truncf %36 : vector<8x128xf32> to vector<8x128xbf16>
      %c0_22 = arith.constant 0 : index
      %c0_23 = arith.constant 0 : index
      %38 = vector.load %arg6[%c0_22, %c0_23] : memref<128x128xbf16, #tpu.memory_space<vmem>>, vector<128x128xbf16>
      %cst_24 = arith.constant dense<0.000000e+00> : vector<8x128xf32>
      %39 = tpu.matmul %37, %38, %cst_24 {dimension_numbers = #tpu.dot_dimension_numbers<[1], [0], [0], [1], [0, 0, 1, 1], [], []>} : vector<8x128xbf16>, vector<128x128xbf16>, vector<8x128xf32> -> vector<8x128xf32>
      %c0_25 = arith.constant 0 : index
      %c0_26 = arith.constant 0 : index
      %40 = vector.load %arg7[%c0_25, %c0_26] : memref<1x128xf32, #tpu.memory_space<vmem>>, vector<1x128xf32>
      %41 = vector.broadcast %40 : vector<1x128xf32> to vector<8x128xf32>
      %42 = arith.addf %39, %41 : vector<8x128xf32>
      %cst_27 = arith.constant dense<0.000000e+00> : vector<128xf32>
      %43 = vector.multi_reduction <add>, %42, %cst_27 [0] : vector<8x128xf32> to vector<128xf32>
      %44 = vector.shape_cast %43 : vector<128xf32> to vector<1x128xf32>
      %cst_28 = arith.constant 8.000000e+00 : f32
      %45 = vector.broadcast %cst_28 : f32 to vector<1x128xf32>
      %46 = arith.divf %44, %45 : vector<1x128xf32>
      %47 = vector.broadcast %46 : vector<1x128xf32> to vector<8x128xf32>
      %48 = arith.subf %42, %47 : vector<8x128xf32>
      %49 = vector.broadcast %46 : vector<1x128xf32> to vector<8x128xf32>
      %50 = arith.subf %42, %49 : vector<8x128xf32>
      %51 = arith.mulf %48, %50 : vector<8x128xf32>
      %cst_29 = arith.constant dense<0.000000e+00> : vector<128xf32>
      %52 = vector.multi_reduction <add>, %51, %cst_29 [0] : vector<8x128xf32> to vector<128xf32>
      %53 = vector.shape_cast %52 : vector<128xf32> to vector<1x128xf32>
      %cst_30 = arith.constant 8.000000e+00 : f32
      %54 = vector.broadcast %cst_30 : f32 to vector<1x128xf32>
      %55 = arith.divf %53, %54 : vector<1x128xf32>
      %56 = vector.broadcast %46 : vector<1x128xf32> to vector<8x128xf32>
      %57 = arith.subf %42, %56 : vector<8x128xf32>
      %cst_31 = arith.constant 9.99999974E-6 : f32
      %58 = vector.broadcast %cst_31 : f32 to vector<1x128xf32>
      %59 = arith.addf %55, %58 : vector<1x128xf32>
      %60 = math.sqrt %59 : vector<1x128xf32>
      %61 = vector.broadcast %60 : vector<1x128xf32> to vector<8x128xf32>
      %62 = arith.divf %57, %61 : vector<8x128xf32>
      %63 = tpu.iota {dimensions = array<i32: 1>} : vector<8x128xi32>
      %c64_i32 = arith.constant 64 : i32
      %64 = vector.broadcast %c64_i32 : i32 to vector<8x128xi32>
      %65 = arith.cmpi slt, %63, %64 : vector<8x128xi32>
      %c64_i32_32 = arith.constant 64 : i32
      %66 = vector.broadcast %c64_i32_32 : i32 to vector<8x128xi32>
      %67 = arith.cmpi sge, %63, %66 : vector<8x128xi32>
      %c64_i32_33 = arith.constant 64 : i32
      %68 = tpu.dynamic_rotate %62 by %c64_i32_33 dim 1 : vector<8x128xf32>, i32 -> vector<8x128xf32>
      %cst_34 = arith.constant 5.000000e-01 : f32
      %69 = vector.broadcast %cst_34 : f32 to vector<8x128xf32>
      %70 = arith.mulf %69, %68 : vector<8x128xf32>
      %71 = math.exp %70 : vector<8x128xf32>
      %c0_35 = arith.constant 0 : index
      %c0_36 = arith.constant 0 : index
      %72 = vector.load %arg10[%c0_35, %c0_36] : memref<8x128xf32, #tpu.memory_space<vmem>>, vector<8x128xf32>
      %73 = arith.mulf %71, %72 : vector<8x128xf32>
      %74 = arith.addf %62, %73 : vector<8x128xf32>
      %cst_37 = arith.constant 0xFF800000 : f32
      %75 = vector.broadcast %cst_37 : f32 to vector<8x128xf32>
      %76 = arith.select %65, %74, %75 : vector<8x128xi1>, vector<8x128xf32>
      %cst_38 = arith.constant dense<0xFF800000> : vector<8xf32>
      %77 = vector.multi_reduction <maximumf>, %76, %cst_38 [1] : vector<8x128xf32> to vector<8xf32>
      %78 = vector.shape_cast %77 : vector<8xf32> to vector<8x1xf32>
      %79 = vector.broadcast %78 : vector<8x1xf32> to vector<8x128xf32>
      %80 = arith.subf %76, %79 : vector<8x128xf32>
      %81 = math.exp %80 : vector<8x128xf32>
      %cst_39 = arith.constant dense<0.000000e+00> : vector<8xf32>
      %82 = vector.multi_reduction <add>, %81, %cst_39 [1] : vector<8x128xf32> to vector<8xf32>
      %83 = vector.shape_cast %82 : vector<8xf32> to vector<8x1xf32>
      %84 = tpu.reciprocal %83 : vector<8x1xf32> -> vector<8x1xf32>
      %85 = vector.broadcast %84 : vector<8x1xf32> to vector<8x128xf32>
      %86 = arith.mulf %81, %85 : vector<8x128xf32>
      %c0_40 = arith.constant 0 : index
      %c0_41 = arith.constant 0 : index
      %87 = vector.load %arg11[%c0_40, %c0_41] : memref<8x128xf32, #tpu.memory_space<vmem>>, vector<8x128xf32>
      tpu.vector_store %arg11[%c0_40, %c0_41], %86 {strides = array<i32>} : memref<8x128xf32, #tpu.memory_space<vmem>>, vector<8x128xf32>,
      %c0_42 = arith.constant 0 : index
      %c0_43 = arith.constant 0 : index
      %88 = vector.load %arg9[%c0_42, %c0_43] : memref<1x128xf32, #tpu.memory_space<vmem>>, vector<1x128xf32>
      %cst_44 = arith.constant 2.000000e+01 : f32
      %89 = vector.broadcast %cst_44 : f32 to vector<1x128xf32>
      %90 = arith.cmpf ogt, %88, %89 : vector<1x128xf32>
      %cst_45 = arith.constant 2.000000e+01 : f32
      %91 = vector.broadcast %cst_45 : f32 to vector<1x128xf32>
      %92 = arith.minimumf %88, %91 : vector<1x128xf32>
      %93 = math.exp %92 : vector<1x128xf32>
      %94 = math.log1p %93 : vector<1x128xf32>
      %95 = arith.select %90, %88, %94 : vector<1x128xi1>, vector<1x128xf32>
      %96 = arith.mulf %71, %71 : vector<8x128xf32>
      %97 = vector.broadcast %95 : vector<1x128xf32> to vector<8x128xf32>
      %98 = arith.divf %96, %97 : vector<8x128xf32>
      %cst_46 = arith.constant 0.000000e+00 : f32
      %99 = vector.broadcast %cst_46 : f32 to vector<8x128xf32>
      %100 = arith.select %65, %98, %99 : vector<8x128xi1>, vector<8x128xf32>
      %cst_47 = arith.constant dense<0.000000e+00> : vector<8xf32>
      %101 = vector.multi_reduction <add>, %100, %cst_47 [1] : vector<8x128xf32> to vector<8xf32>
      %102 = vector.shape_cast %101 : vector<8xf32> to vector<8x1xf32>
      %c0_48 = arith.constant 0 : index
      %c0_49 = arith.constant 0 : index
      %103 = vector.load %arg8[%c0_48, %c0_49] : memref<1x128xf32, #tpu.memory_space<vmem>>, vector<1x128xf32>
      %104 = vector.broadcast %103 : vector<1x128xf32> to vector<8x128xf32>
      %105 = arith.subf %104, %62 : vector<8x128xf32>
      %106 = arith.mulf %105, %105 : vector<8x128xf32>
      %107 = vector.broadcast %95 : vector<1x128xf32> to vector<8x128xf32>
      %108 = arith.divf %106, %107 : vector<8x128xf32>
      %cst_50 = arith.constant 0.000000e+00 : f32
      %109 = vector.broadcast %cst_50 : f32 to vector<8x128xf32>
      %110 = arith.select %65, %108, %109 : vector<8x128xi1>, vector<8x128xf32>
      %cst_51 = arith.constant dense<0.000000e+00> : vector<8xf32>
      %111 = vector.multi_reduction <add>, %110, %cst_51 [1] : vector<8x128xf32> to vector<8xf32>
      %112 = vector.shape_cast %111 : vector<8xf32> to vector<8x1xf32>
      %113 = tpu.iota {dimensions = array<i32: 1>} : vector<1x128xi32>
      %c64_i32_52 = arith.constant 64 : i32
      %114 = vector.broadcast %c64_i32_52 : i32 to vector<1x128xi32>
      %115 = arith.cmpi slt, %113, %114 : vector<1x128xi32>
      %116 = math.log %95 : vector<1x128xf32>
      %cst_53 = arith.constant 0.000000e+00 : f32
      %117 = vector.broadcast %cst_53 : f32 to vector<1x128xf32>
      %118 = arith.select %115, %116, %117 : vector<1x128xi1>, vector<1x128xf32>
      %119 = vector.shape_cast %118 : vector<1x128xf32> to vector<1x1x128xf32>
      %cst_54 = arith.constant dense<0.000000e+00> : vector<1xf32>
      %120 = vector.multi_reduction <add>, %119, %cst_54 [1, 2] : vector<1x1x128xf32> to vector<1xf32>
      %121 = vector.shape_cast %120 : vector<1xf32> to vector<1x1x1xf32>
      %122 = vector.extract %121[0, 0, 0] : f32 from vector<1x1x1xf32>
      %cst_55 = arith.constant 0.000000e+00 : f32
      %123 = vector.broadcast %cst_55 : f32 to vector<8x128xf32>
      %124 = arith.select %67, %62, %123 : vector<8x128xi1>, vector<8x128xf32>
      %cst_56 = arith.constant dense<0.000000e+00> : vector<8xf32>
      %125 = vector.multi_reduction <add>, %124, %cst_56 [1] : vector<8x128xf32> to vector<8xf32>
      %126 = vector.shape_cast %125 : vector<8xf32> to vector<8x1xf32>
      %127 = arith.addf %102, %112 : vector<8x1xf32>
      %cst_57 = arith.constant 6.400000e+01 : f32
      %128 = vector.broadcast %cst_57 : f32 to vector<8x1xf32>
      %129 = arith.subf %127, %128 : vector<8x1xf32>
      %130 = vector.broadcast %122 : f32 to vector<8x1xf32>
      %131 = arith.subf %130, %126 : vector<8x1xf32>
      %132 = arith.addf %129, %131 : vector<8x1xf32>
      %cst_58 = arith.constant 5.000000e-01 : f32
      %133 = vector.broadcast %cst_58 : f32 to vector<8x1xf32>
      %134 = arith.mulf %133, %132 : vector<8x1xf32>
      %135 = vector.shape_cast %134 : vector<8x1xf32> to vector<1x8x1xf32>
      %cst_59 = arith.constant dense<0.000000e+00> : vector<1xf32>
      %136 = vector.multi_reduction <add>, %135, %cst_59 [1, 2] : vector<1x8x1xf32> to vector<1xf32>
      %137 = vector.shape_cast %136 : vector<1xf32> to vector<1x1x1xf32>
      %138 = vector.extract %137[0, 0, 0] : f32 from vector<1x1x1xf32>
      %139 = vector.broadcast %138 : f32 to vector<1x1xf32>
      %c0_60 = arith.constant 0 : index
      %c0_61 = arith.constant 0 : index
      %140 = vector.load %arg12[%c0_60, %c0_61] : memref<1x1xf32, #tpu.memory_space<vmem>>, vector<1x1xf32>
      tpu.vector_store %arg12[%c0_60, %c0_61], %139 {strides = array<i32>} : memref<1x1xf32, #tpu.memory_space<vmem>>, vector<1x1xf32>,
    } else {
    }
    return
  }
  func.func @transform_0(%arg0: i32) -> (i32, i32) {
    %c0_i32 = arith.constant 0 : i32
    %c0_i32_0 = arith.constant 0 : i32
    return %c0_i32, %arg0 : i32, i32
  }
  func.func @transform_1(%arg0: i32) -> (i32, i32) {
    %c0_i32 = arith.constant 0 : i32
    %c0_i32_0 = arith.constant 0 : i32
    return %arg0, %c0_i32 : i32, i32
  }
  func.func @transform_2(%arg0: i32) -> (i32, i32) {
    %c0_i32 = arith.constant 0 : i32
    %c0_i32_0 = arith.constant 0 : i32
    %c0_i32_1 = arith.constant 0 : i32
    return %c0_i32, %c0_i32_0 : i32, i32
  }
  func.func @transform_3(%arg0: i32) -> (i32, i32) {
    %c0_i32 = arith.constant 0 : i32
    %c0_i32_0 = arith.constant 0 : i32
    %c0_i32_1 = arith.constant 0 : i32
    return %c0_i32, %c0_i32_0 : i32, i32
  }
  func.func @transform_4(%arg0: i32) -> (i32, i32) {
    %c0_i32 = arith.constant 0 : i32
    %c0_i32_0 = arith.constant 0 : i32
    %c0_i32_1 = arith.constant 0 : i32
    return %c0_i32, %c0_i32_0 : i32, i32
  }
  func.func @transform_5(%arg0: i32) -> (i32, i32) {
    %c0_i32 = arith.constant 0 : i32
    %c0_i32_0 = arith.constant 0 : i32
    %c0_i32_1 = arith.constant 0 : i32
    return %c0_i32, %c0_i32_0 : i32, i32
  }
  func.func @transform_6(%arg0: i32) -> (i32, i32) {
    %c0_i32 = arith.constant 0 : i32
    %c0_i32_0 = arith.constant 0 : i32
    %c0_i32_1 = arith.constant 0 : i32
    return %c0_i32, %c0_i32_0 : i32, i32
  }
  func.func @transform_7(%arg0: i32) -> (i32, i32) {
    %c0_i32 = arith.constant 0 : i32
    %c0_i32_0 = arith.constant 0 : i32
    %c0_i32_1 = arith.constant 0 : i32
    return %c0_i32, %c0_i32_0 : i32, i32
  }
  func.func @transform_8(%arg0: i32) -> (i32, i32) {
    %c0_i32 = arith.constant 0 : i32
    %c0_i32_0 = arith.constant 0 : i32
    %c0_i32_1 = arith.constant 0 : i32
    return %c0_i32, %c0_i32_0 : i32, i32
  }
  func.func @transform_9(%arg0: i32) -> (i32, i32) {
    %c0_i32 = arith.constant 0 : i32
    %c0_i32_0 = arith.constant 0 : i32
    %c0_i32_1 = arith.constant 0 : i32
    return %c0_i32, %c0_i32_0 : i32, i32
  }
  func.func @transform_10(%arg0: i32) -> (i32, i32) {
    %c0_i32 = arith.constant 0 : i32
    %c0_i32_0 = arith.constant 0 : i32
    %c0_i32_1 = arith.constant 0 : i32
    return %c0_i32, %c0_i32_0 : i32, i32
  }
  func.func @transform_11(%arg0: i32) -> (i32, i32) {
    %c0_i32 = arith.constant 0 : i32
    %c0_i32_0 = arith.constant 0 : i32
    %c0_i32_1 = arith.constant 0 : i32
    return %c0_i32, %c0_i32_0 : i32, i32
  }
}

</mosaic_0001>

<bundles_post_ra>
// kernel: prodlda_forward.7
= control target key start
LH: loop header
LB: loop body
LE: loop exit
PB: predicated region body
PF: predicated region fallthrough
CT: control target
= control target key end

     0   :  { %6 = vsyncpa [#allocation3], 0  ;;  %s627_s0 = inlined_call_operand.vmem [shape: f32[64,256], index: 0, kind: input, shape index: {}]   ;;  %s628_s1 = inlined_call_operand.hbm [shape: f32[64,256], index: 1, kind: output, shape index: {}]  }
   0x1   :  { %8 = vsyncpa [#allocation3 + $0x1], 0  ;;  %s486_s6 = smov 0   ;;  %s488_s7 = smov 0  }
   0x2   :  { %s490_s8 = smov 0   ;;  %s492_s9 = smov 0  }
   0x3 LB: > { %s507_s10 = sadd.s32 4294967295, %s472_s9   ;;  %s328_s11 = sadd.s32 4294967294, %s472_s9   ;;  %s472_s9 = sphi %s492_s9, %s634_s9   ;;  %s468_s8 = sphi %s490_s8, %s633_s8   ;;  %s464_s7 = sphi %s488_s7, %s632_s7   ;;  %s460_s6 = sphi %s486_s6, %s631_s6  }
   0x4   : > { %s511_s12 = sadd.s32 1, %s472_s9   ;;  %s47_s13 = sadd.s32 1, %s468_s8 }
   0x5   : > { %s44_s14 = ssub.s32 %s472_s9, %s511_s12  ;;  %p57_p0 = scmp.ne.s32.totalorder %s468_s8, %s464_s7 }
   0x6   : > { %p45_p1 = scmp.eq.s32.totalorder %s44_s14, 0  ;;  %p58_p2 = scmp.eq.s32.totalorder %s507_s10, 1 }
   0x7   : > { %p63_p3 = scmp.ne.s32.totalorder %s464_s7, %s460_s6  ;;  %p64_p4 = scmp.eq.s32.totalorder %s328_s11, 1 }
   0x8   : > { %s522_s15 = scalar_select %p45_p1, %s468_s8, %s47_s13  }
   0x9   : > { %p524_p5 = por %p58_p2, %p57_p0  ;;  %p528_p6 = por %p64_p4, %p63_p3 }
   0xa   : > { %p331_p7 = scmp.ge.s32.totalorder %s472_s9, 1  ;;  %p92_p8 = scmp.lt.s32.totalorder %s472_s9, 3 }
   0xc   : > { %p93_p9 = pnand %p331_p7, %p92_p8 }
   0xd   : > { %s333_s18 = sshll.u32 (!%p93_p9), %s507_s10, 2  ;;  %s110_s23 = sand.u32 (!%p93_p9), 1, %s464_s7  }
   0xe   : > { %96 = sbr.rel (%p93_p9) target bundleno = 306 (0x132), region = 24  ;;  %p114_p10 = scmp.lt.s32.totalorder (!%p93_p9), %s333_s18, 7 }
   0xf   : > { %s332_s24 = sshll.u32 (!%p93_p9), %s110_s23, 6  ;;  %s344_s26 = sshll.u32 (!%p93_p9), %s507_s10, 6 }
  0x10   : > { %s575_s25 = scalar_lea.vmem (!%p93_p9), [#allocation2], %s332_s24  ;;  %s262_s29 = scalar_lea.hbm (!%p93_p9), %s628_s1, %s344_s26 }
  0x11   : > { %s263_s30 = sshll.u32 (!%p93_p9), %s575_s25, 4  ;;  %s265_s2 = sshll.u32 (!%p93_p9), %s262_s29, 4  ;;  %s264_s30 = int_to_ptr.vmem [resolvable:$true] %s263_s30  ;;  %s266_s2 = int_to_ptr.hbm [resolvable:$true] %s265_s2 }
  0x12   : > { %s250_s3 = scalar_lea.sflag (!%p93_p9), [#allocation3], %s110_s23  ;;  %s424_s4 = sshra.s32 (!%p93_p9), %s266_s2, 4  ;;  %s425_s4 = int_to_ptr.hbm [resolvable:$true] %s424_s4 }
  0x13   : > { %s636_s18 = smov (!%p114_p10, %s333_s18), 7  ;;  %s426_s5 = scalar_lea.hbm %s425_s4, 64 }
  0x14   : > { %s342_s19 = sshll.u32 %s636_s18, 4  ;;  %p427_p11 = scmp.ne.s32.totalorder %s425_s4, %s426_s5 }
  0x15   : > { %s118_s22 = scalar_lea.vmem %s627_s0, %s342_s19  ;;  %s430_s13 = scalar_lea.hbm %s628_s1, 128 }
  0x16   : > { %v125_v0 = vld [vmem:[%s118_s22 + $0x20] sm:$0xff]  ;;  %v126_v1 = vld [vmem:[%s118_s22 + $0x28] sm:$0xff]  ;;  %v127_v6 = vld [vmem:[%s118_s22 + $0x30] sm:$0xff]  ;;  %p428_p12 = pnand %p427_p11, %p524_p5  ;;  %p431_p0 = scmp.lt.s32.totalorder %s425_s4, %s628_s1 }
  0x17   : > { %v121_v2 = vld [vmem:[%s118_s22] sm:$0xff]  ;;  %v135_v3 = vmax.f32 %v125_v0, %v126_v1  ;;  %v122_v4 = vld [vmem:[%s118_s22 + $0x8] sm:$0xff]  ;;  %v128_v7 = vld [vmem:[%s118_s22 + $0x38] sm:$0xff]  ;;  %p432_p1 = scmp.lt.s32.totalorder %s430_s13, %s426_s5 }
  0x18   : > { %v129_v5 = vmax.f32 %v121_v2, %v122_v4  ;;  %v123_v8 = vld [vmem:[%s118_s22 + $0x10] sm:$0xff]  ;;  %v124_v9 = vld [vmem:[%s118_s22 + $0x18] sm:$0xff]  ;;  %v138_v10 = vmax.f32 %v127_v6, %v128_v7  ;;  %p429_p13 = pneg %p428_p12 }
  0x19   : > { %136 = vmax.xlane.f32.xlu1 %v135_v3  ;;  %v132_v11 = vmax.f32 %v123_v8, %v124_v9  ;;  %p433_p2 = por %p432_p1, %p431_p0 }
  0x1a   : > { %130 = vmax.xlane.f32.xlu0 %v129_v5 }
  0x1b   : > { %p434_p3 = pnand %p433_p2, %p429_p13 }
  0x21   : > { %139 = vmax.xlane.f32.xlu1 %v138_v10 }
  0x22   : > { %133 = vmax.xlane.f32.xlu0 %v132_v11 }
  0x8c   : > { %v137_v12 = vpop.xlane.xlu1 %136 }
  0x8d   : > { %v145_v13 = vsub.f32 %v125_v0, %v137_v12  ;;  %v146_v14 = vsub.f32 %v126_v1, %v137_v12  ;;  %v131_v15 = vpop.xlane.xlu0 %130 }
  0x8e   : > { %v141_v16 = vsub.f32 %v121_v2, %v131_v15  ;;  %v142_v17 = vsub.f32 %v122_v4, %v131_v15 }
  0x8f   : > { %v157_v18 = vmul.f32 1.442695, %v145_v13  ;;  %v159_v19 = vmul.f32 1.442695, %v146_v14 }
  0x90   : > { %v149_v20 = vmul.f32 1.442695, %v141_v16  ;;  %v151_v21 = vmul.f32 1.442695, %v142_v17 }
  0x91   : > { %386 = vpow2.f32 %v157_v18 }
  0x92   : > { %388 = vpow2.f32 %v159_v19 }
  0x93   : > { %390 = vpow2.f32 %v149_v20 }
  0x94   : > { %392 = vpow2.f32 %v151_v21  ;;  %v140_v22 = vpop.xlane.xlu1 %139 }
  0x95   : > { %v147_v23 = vsub.f32 %v127_v6, %v140_v22  ;;  %v148_v24 = vsub.f32 %v128_v7, %v140_v22  ;;  %v134_v25 = vpop.xlane.xlu0 %133 }
  0x96   : > { %v143_v26 = vsub.f32 %v123_v8, %v134_v25  ;;  %v144_v27 = vsub.f32 %v124_v9, %v134_v25 }
  0x97   : > { %v538_v28 = vpop.eup %386  ;;  %v161_v29 = vmul.f32 1.442695, %v147_v23  ;;  %v163_v30 = vmul.f32 1.442695, %v148_v24 }
  0x98   : > { %v389_v31 = vpop.eup %388  ;;  %v153_v32 = vmul.f32 1.442695, %v143_v26  ;;  %v155_v33 = vmul.f32 1.442695, %v144_v27 }
  0x99   : > { %v540_v34 = vpop.eup %390  ;;  %394 = vpow2.f32 %v161_v29  ;;  %v171_v35 = vadd.f32 %v389_v31, %v538_v28 }
  0x9a   : > { %v543_v36 = vpop.eup %392  ;;  %396 = vpow2.f32 %v163_v30 }
  0x9b   : > { %398 = vpow2.f32 %v153_v32  ;;  %172 = vadd.xlane.f32.xlu0 %v171_v35  ;;  %v165_v37 = vadd.f32 %v543_v36, %v540_v34 }
  0x9c   : > { %400 = vpow2.f32 %v155_v33 }
  0x9d   : > { %166 = vadd.xlane.f32.xlu2 %v165_v37 }
  0x9f   : > { %v547_v38 = vpop.eup %394 }
  0xa0   : > { %v549_v39 = vpop.eup %396 }
  0xa1   : > { %v551_v40 = vpop.eup %398  ;;  %v174_v41 = vadd.f32 %v549_v39, %v547_v38 }
  0xa2   : > { %v555_v42 = vpop.eup %400 }
  0xa3   : > { %175 = vadd.xlane.f32.xlu1 %v174_v41  ;;  %v168_v43 = vadd.f32 %v555_v42, %v551_v40 }
  0xa5   : > { %169 = vadd.xlane.f32.xlu2 %v168_v43 }
 0x10e   : > { %v173_v44 = vpop.xlane.xlu0 %172 }
 0x10f   : > { %402 = vrcp.f32 %v173_v44  ;;  %v216_v53 = vand.u32 2147483648, %v173_v44  ;;  %v214_v56 = vand.u32 2147483647, %v173_v44  ;;  %vm210_vm2 = vweird.f32 %v173_v44 }
 0x110   : > { %v167_v45 = vpop.xlane.xlu2 %166 }
 0x111   : > { %404 = vrcp.f32 %v167_v45  ;;  %v186_v57 = vand.u32 2147483647, %v167_v45  ;;  %v188_v58 = vand.u32 2147483648, %v167_v45  ;;  %vm182_vm3 = vweird.f32 %v167_v45 }
 0x112   : > { %v217_v62 = vor.u32 1.1754944e-38, %v216_v53  ;;  %vm215_vm5 = vcmp.eq.f32.partialorder %v214_v56, 8.507059e+37 }
 0x113   : > { %vm187_vm7 = vcmp.eq.f32.partialorder %v186_v57, 8.507059e+37  ;;  %v189_v3 = vor.u32 1.1754944e-38, %v188_v58 }
 0x115   : > { %v403_v46 = vpop.eup %402 }
 0x116   : > { %v206_v47 = vmul.f32 %v403_v46, %v173_v44  ;;  %v559_v48 = vpop.xlane.xlu1 %175  ;;  %vm211_vm0 = vweird.f32 %v403_v46 }
 0x117   : > { %v405_v49 = vpop.eup %404  ;;  %406 = vrcp.f32 %v559_v48  ;;  %vm212_vm4 = vmor %vm210_vm2, %vm211_vm0  ;;  %v228_v10 = vand.u32 2147483647, %v559_v48  ;;  %v230_v11 = vand.u32 2147483648, %v559_v48  ;;  %vm224_vm9 = vweird.f32 %v559_v48 }
 0x118   : > { %v178_v50 = vmul.f32 %v405_v49, %v167_v45  ;;  %v207_v51 = vsub.f32 1.0, %v206_v47  ;;  %v562_v52 = vpop.xlane.xlu2 %169  ;;  %vm183_vm1 = vweird.f32 %v405_v49 }
 0x119   : > { %408 = vrcp.f32 %v562_v52  ;;  %vm184_vm6 = vmor %vm182_vm3, %vm183_vm1  ;;  %v202_v18 = vand.u32 2147483648, %v562_v52  ;;  %v231_v19 = vor.u32 1.1754944e-38, %v230_v11  ;;  %v200_v21 = vand.u32 2147483647, %v562_v52 }
 0x11a   : > { %v179_v54 = vsub.f32 1.0, %v178_v50  ;;  %v208_v55 = vmul.f32 %v403_v46, %v207_v51  ;;  %vm229_vm12 = vcmp.eq.f32.partialorder %v228_v10, 8.507059e+37  ;;  %vm196_vm13 = vweird.f32 %v562_v52 }
 0x11b   : > { %v203_v27 = vor.u32 1.1754944e-38, %v202_v18  ;;  %vm201_vm15 = vcmp.eq.f32.partialorder %v200_v21, 8.507059e+37 }
 0x11c   : > { %v180_v59 = vmul.f32 %v405_v49, %v179_v54  ;;  %v209_v60 = vadd.f32 %v403_v46, %v208_v55 }
 0x11d   : > { %v407_v61 = vpop.eup %406 }
 0x11e   : > { %v181_v63 = vadd.f32 %v405_v49, %v180_v59  ;;  %v213_v0 = vsel %vm212_vm4, %v403_v46, %v209_v60  ;;  %v220_v1 = vmul.f32 %v407_v61, %v559_v48  ;;  %vm225_vm8 = vweird.f32 %v407_v61 }
 0x11f   : > { %v409_v2 = vpop.eup %408  ;;  %v218_v4 = vsel %vm215_vm5, %v217_v62, %v213_v0  ;;  %vm226_vm10 = vmor %vm224_vm9, %vm225_vm8 }
 0x120   : > { %v185_v5 = vsel %vm184_vm6, %v405_v49, %v181_v63  ;;  %v237_v6 = vmul.f32 %v538_v28, %v218_v4  ;;  %v238_v7 = vmul.f32 %v389_v31, %v218_v4  ;;  %v221_v8 = vsub.f32 1.0, %v220_v1 }
 0x121   : > { %v190_v9 = vsel %vm187_vm7, %v189_v3, %v185_v5  ;;  %v192_v12 = vmul.f32 %v409_v2, %v562_v52  ;;  %vm197_vm11 = vweird.f32 %v409_v2 }
 0x122   : > { %v233_v13 = vmul.f32 %v540_v34, %v190_v9  ;;  %v234_v14 = vmul.f32 %v543_v36, %v190_v9  ;;  %245 = vst [vmem:[%s575_s25 + $0x20] sm:$0xff] %v237_v6  ;;  %v222_v15 = vmul.f32 %v407_v61, %v221_v8  ;;  %vm198_vm14 = vmor %vm196_vm13, %vm197_vm11 }
 0x123   : > { %246 = vst [vmem:[%s575_s25 + $0x28] sm:$0xff] %v238_v7  ;;  %v193_v16 = vsub.f32 1.0, %v192_v12 }
 0x124   : > { %241 = vst [vmem:[%s575_s25] sm:$0xff] %v233_v13  ;;  %v223_v17 = vadd.f32 %v407_v61, %v222_v15 }
 0x125   : > { %242 = vst [vmem:[%s575_s25 + $0x8] sm:$0xff] %v234_v14  ;;  %v194_v20 = vmul.f32 %v409_v2, %v193_v16 }
 0x126   : > { %v227_v22 = vsel %vm226_vm10, %v407_v61, %v223_v17 }
 0x127   : > { %v232_v23 = vsel %vm229_vm12, %v231_v19, %v227_v22  ;;  %v195_v24 = vadd.f32 %v409_v2, %v194_v20 }
 0x128   : > { %v239_v25 = vmul.f32 %v547_v38, %v232_v23  ;;  %v240_v26 = vmul.f32 %v549_v39, %v232_v23 }
 0x129   : > { %v199_v28 = vsel %vm198_vm14, %v409_v2, %v195_v24 }
 0x12a   : > { %247 = vst [vmem:[%s575_s25 + $0x30] sm:$0xff] %v239_v25  ;;  %v204_v29 = vsel %vm201_vm15, %v203_v27, %v199_v28 }
 0x12b   : > { %248 = vst [vmem:[%s575_s25 + $0x38] sm:$0xff] %v240_v26  ;;  %v235_v30 = vmul.f32 %v551_v40, %v204_v29  ;;  %v236_v31 = vmul.f32 %v555_v42, %v204_v29 }
 0x12d   : > { %243 = vst [vmem:[%s575_s25 + $0x10] sm:$0xff] %v235_v30 }
 0x12e   : > { %244 = vst [vmem:[%s575_s25 + $0x18] sm:$0xff] %v236_v31 }
 0x12f   : > { %437 = shalt.err (!%p434_p3)
}
 0x130   : > { %s474_s19 = smov 256   ;;  %s475_s20 = smov 16  }
 0x131   : > { %345 = dma.vmem_to_hbm [thread:$0]  (%p524_p5), %s264_s30, 1024, %s266_s2, %s250_s3, %s474_s19, %s474_s19, %s475_s20  }
 0x132 PF: > { %p351_p4 = scmp.ge.s32.totalorder %s472_s9, 2  ;;  %s280_s21 = sand.u32 1, %s460_s6  }
 0x133   : > { %s281_s22 = scalar_lea.sflag [#allocation3], %s280_s21 }
 0x134   : > { %p348_p7 = pnand %p351_p4, %p528_p6 }
 0x136   : > { %p349_p8 = pneg %p348_p7 }
 0x138   : > { %455 = dma.done.wait (%p349_p8), %s281_s22, 1024  }
 0x139   : > { %457 = vsyncadd (%p349_p8), %s281_s22, 4294966272  ;;  %p11_p9 = scmp.ge.s32.totalorder %s511_s12, 4   ;;  %s631_s6 = smov %s464_s7 }
 0x13a   : > { %s632_s7 = smov %s468_s8  ;;  %s633_s8 = smov %s522_s15 }
 0x13b   : > { %s634_s9 = smov %s511_s12  ;;  %13 = sbr.rel (!%p11_p9) target bundleno = 3 (0x3), region = 59 }
 0x140   :  { %287 = vsyncpa [#allocation3], 1 }
 0x141   :  { %289 = vsyncpa [#allocation3 + $0x1], 1 }

// kernel: prodlda_forward.5
= control target key start
LH: loop header
LB: loop body
LE: loop exit
PB: predicated region body
PF: predicated region fallthrough
CT: control target
= control target key end

     0   :  { %s648_s12 = smov 0   ;;  %s650_s13 = smov 0   ;;  %s734_s0 = inlined_call_operand.vmem [shape: f32[8,128], index: 0, kind: input, shape index: {}]   ;;  %s735_s1 = inlined_call_operand.vmem [shape: bf16[128,256], index: 1, kind: input, shape index: {}]   ;;  %s736_s2 = inlined_call_operand.vmem [shape: f32[8,256], index: 2, kind: output, shape index: {0}]   ;;  %s737_s3 = inlined_call_operand.vmem [shape: f32[8,1], index: 3, kind: output, shape index: {1}]  }
   0x1   :  { %s652_s14 = smov 0  }
   0x2 LB: > { %s664_s15 = sadd.s32 4294967295, %s622_s14   ;;  %s667_s16 = sadd.s32 1, %s622_s14   ;;  %s622_s14 = sphi %s652_s14, %s740_s14   ;;  %s618_s13 = sphi %s650_s13, %s739_s13   ;;  %s614_s12 = sphi %s648_s12, %s738_s12  }
   0x3   : > { %s39_s17 = ssub.s32 %s622_s14, %s667_s16  ;;  %s42_s18 = sadd.s32 1, %s618_s13 }
   0x4   : > { %p40_p0 = scmp.eq.s32.totalorder %s39_s17, 0  ;;  %p49_p1 = scmp.ne.s32.totalorder %s618_s13, %s614_s12 }
   0x5   : > { %p50_p2 = scmp.eq.s32.totalorder %s622_s14, 0  ;;  %p509_p4 = scmp.ge.s32.totalorder %s622_s14, 2 }
   0x6   : > { %s676_s19 = scalar_select %p40_p0, %s618_s13, %s42_s18  }
   0x7   : > { %p51_p3 = por %p50_p2, %p49_p1  ;;  %125 = sbr.rel (%p509_p4) target bundleno = 32 (0x20), region = 20 }
   0xc   : > { %128 = sbr.rel (!%p51_p3) target bundleno = 32 (0x20), region = 24  ;;  %s130_s20 = sand.u32 (%p51_p3), 1, %s618_s13  }
   0xd   : > { %s511_s21 = sshll.u32 (%p51_p3), %s622_s14, 2  ;;  %s510_s22 = sshll.u32 (%p51_p3), %s130_s20, 6 }
   0xe   : > { %s684_s25 = scalar_lea.vmem (%p51_p3), %s735_s1, %s511_s21  ;;  %s132_s26 = scalar_lea.vmem (%p51_p3), [#allocation4], %s510_s22 }
   0xf   : > { %v151_v0 = vld [vmem:[%s684_s25] sm:$0xf] (%p51_p3)  ;;  %v153_v1 = vld [vmem:[%s684_s25 + $0x8] sm:$0xf] (%p51_p3)  ;;  %v155_v2 = vld [vmem:[%s684_s25 + $0x10] sm:$0xf] (%p51_p3) }
  0x10   : > { %152 = vst [vmem:[%s132_s26] sm:$0xf] (%p51_p3), %v151_v0  ;;  %v157_v3 = vld [vmem:[%s684_s25 + $0x18] sm:$0xf] (%p51_p3)  ;;  %v159_v4 = vld [vmem:[%s684_s25 + $0x20] sm:$0xf] (%p51_p3) }
  0x11   : > { %154 = vst [vmem:[%s132_s26 + $0x4] sm:$0xf] %v153_v1  ;;  %v161_v5 = vld [vmem:[%s684_s25 + $0x28] sm:$0xf]  ;;  %v163_v6 = vld [vmem:[%s684_s25 + $0x30] sm:$0xf] }
  0x12   : > { %156 = vst [vmem:[%s132_s26 + $0x8] sm:$0xf] %v155_v2  ;;  %v165_v7 = vld [vmem:[%s684_s25 + $0x38] sm:$0xf]  ;;  %v167_v8 = vld [vmem:[%s684_s25 + $0x40] sm:$0xf] }
  0x13   : > { %158 = vst [vmem:[%s132_s26 + $0xc] sm:$0xf] %v157_v3  ;;  %v169_v9 = vld [vmem:[%s684_s25 + $0x48] sm:$0xf]  ;;  %v171_v10 = vld [vmem:[%s684_s25 + $0x50] sm:$0xf] }
  0x14   : > { %160 = vst [vmem:[%s132_s26 + $0x10] sm:$0xf] %v159_v4  ;;  %v173_v11 = vld [vmem:[%s684_s25 + $0x58] sm:$0xf]  ;;  %v175_v12 = vld [vmem:[%s684_s25 + $0x60] sm:$0xf] }
  0x15   : > { %162 = vst [vmem:[%s132_s26 + $0x14] sm:$0xf] %v161_v5  ;;  %v177_v13 = vld [vmem:[%s684_s25 + $0x68] sm:$0xf]  ;;  %v179_v14 = vld [vmem:[%s684_s25 + $0x70] sm:$0xf] }
  0x16   : > { %164 = vst [vmem:[%s132_s26 + $0x18] sm:$0xf] %v163_v6  ;;  %v181_v15 = vld [vmem:[%s684_s25 + $0x78] sm:$0xf] }
  0x17   : > { %166 = vst [vmem:[%s132_s26 + $0x1c] sm:$0xf] %v165_v7 }
  0x18   : > { %168 = vst [vmem:[%s132_s26 + $0x20] sm:$0xf] %v167_v8 }
  0x19   : > { %170 = vst [vmem:[%s132_s26 + $0x24] sm:$0xf] %v169_v9 }
  0x1a   : > { %172 = vst [vmem:[%s132_s26 + $0x28] sm:$0xf] %v171_v10 }
  0x1b   : > { %174 = vst [vmem:[%s132_s26 + $0x2c] sm:$0xf] %v173_v11 }
  0x1c   : > { %176 = vst [vmem:[%s132_s26 + $0x30] sm:$0xf] %v175_v12 }
  0x1d   : > { %178 = vst [vmem:[%s132_s26 + $0x34] sm:$0xf] %v177_v13 }
  0x1e   : > { %180 = vst [vmem:[%s132_s26 + $0x38] sm:$0xf] %v179_v14 }
  0x1f   : > { %182 = vst [vmem:[%s132_s26 + $0x3c] sm:$0xf] %v181_v15 }
  0x20 PF: > { %p512_p5 = scmp.ge.s32.totalorder %s622_s14, 1  ;;  %p237_p6 = scmp.lt.s32.totalorder %s622_s14, 3 }
  0x22   : > { %p238_p7 = pnand %p512_p5, %p237_p6 }
  0x23   : > { %s244_s27 = sand.u32 (!%p238_p7), 1, %s614_s12   ;;  %p266_p8 = scmp.lt.s32.totalorder (!%p238_p7), %s664_s15, 1 }
  0x24   : > { %241 = sbr.rel (%p238_p7) target bundleno = 664 (0x298), region = 65  ;;  %s513_s28 = sshll.u32 (!%p238_p7), %s244_s27, 6 }
  0x25   : > { %s246_s7 = scalar_lea.vmem (!%p238_p7), [#allocation4], %s513_s28  ;;  %p515_p9 = scmp.ne.s32.totalorder (!%p238_p7), %s664_s15, 0 }
  0x29   : > { %s267_s29 = scalar_select %p266_p8, %s664_s15, 1 }
  0x2a   : > { %273 = sbr.rel (%p515_p9) target bundleno = 50 (0x32), region = 73 }
  0x2b   : > { %s514_s30 = sshll.u32 %s267_s29, 3 }
  0x2c   : > { %s710_s6 = scalar_lea.vmem %s736_s2, %s514_s30 }
  0x2f   : > { %vm274_vm0 = vcmask 7168   ;;  %v624_v16 = vmov -inf   ;;  %v625_v17 = vmov 0.0  }
  0x30   : > { %275 = vst.msk [vmem:[#allocation2] sm:$0xff] %vm274_vm0, %v624_v16 }
  0x31   : > { %276 = vst.msk [vmem:[#allocation3] sm:$0xff] %vm274_vm0, %v625_v17 }
  0x32 PF: > { %v558_v18 = vld [vmem:[%s246_s7 + $0x38] sm:$0xff]  ;;  %v557_v19 = vld [vmem:[%s246_s7 + $0x30] sm:$0xff]  ;;  %v556_v20 = vld [vmem:[%s246_s7 + $0x28] sm:$0xff]  ;;  %v626_v28 = vmov 8.0   ;;  %v627_v11 = vmov 0   ;;  %vm428_vm8 = vcmask 7168  }
  0x33   : > { %343 = vmatpush.bf16.msra.mxu0 %v558_v18  ;;  %v555_v21 = vld [vmem:[%s246_s7 + $0x20] sm:$0xff]  ;;  %v554_v22 = vld [vmem:[%s246_s7 + $0x18] sm:$0xff]  ;;  %v553_v23 = vld [vmem:[%s246_s7 + $0x10] sm:$0xff]  ;;  %588 = vrcp.f32 %v626_v28  ;;  %587 = vset.pattern.permute.xlu0 %v627_v11  ;;  %p548_p10 = scmp.ne.s32.totalorder %s664_s15, 1 }
  0x34   : > { %v552_v24 = vld [vmem:[%s246_s7 + $0x8] sm:$0xff]  ;;  %v551_v25 = vld [vmem:[%s246_s7] sm:$0xff]  ;;  %v277_v26 = vld [vmem:[%s734_s0] sm:$0xff] }
  0x35   : > { %v278_v27 = vpack.c.bf16 %v277_v26, %v277_v26 }
  0x37   : > { %344 = vmatpush.bf16.msra.mxu0 %v557_v19  ;;  %v408_v12 = vld [vmem:[#allocation2] sm:$0xff] }
  0x39   : > { %v589_v29 = vpop.eup %588 }
  0x3a   : > { %v363_v30 = vmul.f32 8.0, %v589_v29  ;;  %vm367_vm1 = vweird.f32 %v589_v29 }
  0x3b   : > { %345 = vmatpush.bf16.msra.mxu0 %v556_v20 }
  0x3c   : > { %v364_v31 = vsub.f32 1.0, %v363_v30 }
  0x3e   : > { %v365_v34 = vmul.f32 %v589_v29, %v364_v31 }
  0x3f   : > { %346 = vmatpush.bf16.msra.mxu0 %v555_v21 }
  0x40   : > { %v366_v37 = vadd.f32 %v589_v29, %v365_v34 }
  0x42   : > { %v368_v41 = vsel %vm367_vm1, %v589_v29, %v366_v37 }
  0x43   : > { %347 = vmatpush.bf16.msra.mxu0 %v554_v22  ;;  %v412_v22 = vld [vmem:[#allocation3] sm:$0xff] }
  0x47   : > { %348 = vmatpush.bf16.msra.mxu0 %v553_v23 }
  0x4b   : > { %349 = vmatpush.bf16.msra.mxu0 %v552_v24 }
  0x4f   : > { %350 = vmatpush.bf16.msra.mxu0 %v551_v25 }
  0x52   : > { %351 = vmatmul.bf16.vlgmr.msra.gmra.mxu0 %v278_v27 }
  0xcf   : > { %v352_v32 = vpop.f32.mrf.mxu0 }
  0xd0   : > { %v356_v33 = vrot.slane %v352_v32, 4 }
  0xd2   : > { %v357_v35 = vadd.f32 %v356_v33, %v352_v32 }
  0xd4   : > { %v358_v36 = vrot.slane %v357_v35, 2 }
  0xd6   : > { %v359_v38 = vadd.f32 %v358_v36, %v357_v35 }
  0xd7   : > { %v354_v39 = vpop.f32.mrf.mxu0 }
  0xd8   : > { %v360_v40 = vrot.slane %v359_v38, 1 }
  0xda   : > { %v361_v42 = vadd.f32 %v360_v40, %v359_v38 }
  0xdc   : > { %v369_v43 = vmul.f32 %v368_v41, %v361_v42 }
  0xde   : > { %v370_v44 = vsub.f32 %v352_v32, %v369_v43 }
  0xe0   : > { %v371_v45 = vmul.f32 %v370_v44, %v370_v44 }
  0xe2   : > { %v372_v46 = vrot.slane %v371_v45, 4 }
  0xe4   : > { %v373_v47 = vadd.f32 %v372_v46, %v371_v45 }
  0xe6   : > { %v374_v48 = vrot.slane %v373_v47, 2 }
  0xe8   : > { %v375_v49 = vadd.f32 %v374_v48, %v373_v47 }
  0xea   : > { %v376_v50 = vrot.slane %v375_v49, 1 }
  0xec   : > { %v377_v51 = vadd.f32 %v376_v50, %v375_v49 }
  0xee   : > { %v378_v52 = vmul.f32 %v377_v51, %v368_v41 }
  0xf0   : > { %v379_v53 = vadd.f32 1e-05, %v378_v52 }
  0xf2   : > { %590 = vrsqrt.f32 %v379_v53  ;;  %vm387_vm2 = vcmp.eq.f32.partialorder %v379_v53, inf  ;;  %v390_v61 = vand.u32 2147483648, %v379_v53  ;;  %vm389_vm3 = vcmp.eq.f32.partialorder %v379_v53, 0.0 }
  0xf8   : > { %v591_v54 = vpop.eup %590 }
  0xf9   : > { %v381_v55 = vmul.f32 %v591_v54, %v379_v53 }
  0xfb   : > { %v382_v56 = vmul.f32 %v591_v54, %v381_v55 }
  0xfd   : > { %v383_v57 = vmul.f32 0.5, %v382_v56 }
  0xff   : > { %v384_v58 = vsub.f32 1.5, %v383_v57 }
 0x101   : > { %v385_v59 = vmul.f32 %v591_v54, %v384_v58 }
 0x103   : > { %v386_v60 = vmul.f32 %v385_v59, %v379_v53 }
 0x105   : > { %v388_v62 = vsel %vm387_vm2, %v379_v53, %v386_v60 }
 0x106   : > { %v391_v63 = vsel %vm389_vm3, %v390_v61, %v388_v62 }
 0x107   : > { %592 = vrcp.f32 %v391_v63  ;;  %v403_v3 = vand.u32 2147483648, %v391_v63  ;;  %v401_v5 = vand.u32 2147483647, %v391_v63  ;;  %vm397_vm5 = vweird.f32 %v391_v63 }
 0x109   : > { %v404_v7 = vor.u32 1.1754944e-38, %v403_v3  ;;  %vm402_vm7 = vcmp.eq.f32.partialorder %v401_v5, 8.507059e+37 }
 0x10d   : > { %v593_v0 = vpop.eup %592 }
 0x10e   : > { %v393_v1 = vmul.f32 %v593_v0, %v391_v63  ;;  %vm398_vm4 = vweird.f32 %v593_v0 }
 0x10f   : > { %vm399_vm6 = vmor %vm397_vm5, %vm398_vm4 }
 0x110   : > { %v394_v2 = vsub.f32 1.0, %v393_v1 }
 0x112   : > { %v395_v4 = vmul.f32 %v593_v0, %v394_v2 }
 0x114   : > { %v396_v6 = vadd.f32 %v593_v0, %v395_v4 }
 0x116   : > { %v400_v8 = vsel %vm399_vm6, %v593_v0, %v396_v6 }
 0x117   : > { %v405_v9 = vsel %vm402_vm7, %v404_v7, %v400_v8 }
 0x118   : > { %v406_v10 = vmul.f32 %v405_v9, %v370_v44 }
 0x11a   : > { %409 = vmax.xlane.f32.xlu0 %v406_v10  ;;  %407 = vst [vmem:[%s710_s6] sm:$0xff] %v406_v10 }
 0x18d   : > { %v410_v13 = vpop.xlane.xlu0 %409 }
 0x18e   : > { %v411_v14 = vmax.f32 %v408_v12, %v410_v13 }
 0x190   : > { %v413_v15 = vsub.f32 %v408_v12, %v411_v14  ;;  %430 = vst.msk [vmem:[#allocation2] sm:$0xff] %vm428_vm8, %v411_v14  ;;  %419 = vperm.xlu0 %587, %v411_v14  }
 0x192   : > { %v414_v20 = vmul.f32 1.442695, %v413_v15 }
 0x202   : > { %v420_v16 = vpop.permute.xlu0 %419 }
 0x203   : > { %v422_v17 = vsub.f32 %v406_v10, %v420_v16 }
 0x205   : > { %v423_v18 = vmul.f32 1.442695, %v422_v17 }
 0x207   : > { %594 = vpow2.f32 %v423_v18 }
 0x208   : > { %596 = vpow2.f32 %v414_v20 }
 0x20d   : > { %v595_v19 = vpop.eup %594 }
 0x20e   : > { %425 = vadd.xlane.f32.xlu1 %v595_v19  ;;  %v597_v21 = vpop.eup %596 }
 0x20f   : > { %v416_v23 = vmul.f32 %v597_v21, %v412_v22 }
 0x280   : > { %434 = sbr.rel (%p548_p10) target bundleno = 664 (0x298), region = 77 }
 0x281   : > { %v426_v24 = vpop.xlane.xlu1 %425 }
 0x282   : > { %v427_v25 = vadd.f32 %v426_v24, %v416_v23 }
 0x284   : > { %429 = vst.msk [vmem:[#allocation3] sm:$0xff] %vm428_vm8, %v427_v25 }
 0x285   : > { %v435_v28 = vld [vmem:[#allocation2] sm:$0xff] }
 0x28b   : > { %v436_v26 = vld [vmem:[#allocation3] sm:$0xff] }
 0x28c   : > { %598 = vlog2.f32 %v436_v26 }
 0x292   : > { %v599_v27 = vpop.eup %598 }
 0x293   : > { %v438_v29 = vmul.f32 0.6931472, %v599_v27 }
 0x295   : > { %v439_v30 = vadd.f32 %v438_v29, %v435_v28 }
 0x297   : > { %440 = vst.msk [vmem:[%s737_s3] sm:$0xff] %vm428_vm8, %v439_v30 }
 0x298 PF: > { %p11_p11 = scmp.ge.s32.totalorder %s667_s16, 4   ;;  %s738_s12 = smov %s618_s13 }
 0x299   : > { %s739_s13 = smov %s676_s19  ;;  %s740_s14 = smov %s667_s16 }
 0x29a   :  { %13 = sbr.rel (!%p11_p11) target bundleno = 2 (0x2), region = 120 }

// kernel: prodlda_forward.6
= control target key start
LH: loop header
LB: loop body
LE: loop exit
PB: predicated region body
PF: predicated region fallthrough
CT: control target
= control target key end

     0   :  { %10 = vsyncpa [#allocation4], 0  ;;  %s686_s0 = inlined_call_operand.vmem [shape: f32[8,256], index: 0, kind: input, shape index: {}]   ;;  %s687_s1 = inlined_call_operand.vmem [shape: f32[8,256], index: 1, kind: input, shape index: {}]   ;;  %s688_s2 = inlined_call_operand.vmem [shape: f32[8,1], index: 2, kind: input, shape index: {}]   ;;  %s689_s3 = inlined_call_operand.hbm [shape: f32[8,256], index: 3, kind: output, shape index: {0}]   ;;  %s690_s4 = inlined_call_operand.hbm [shape: f32[1,1], index: 4, kind: output, shape index: {1}]  }
   0x1   :  { %12 = vsyncpa [#allocation4 + $0x1], 0 }
   0x2   :  { %13 = vsyncpa [#allocation6], 0  ;;  %s571_s15 = smov 0   ;;  %s573_s16 = smov 0  }
   0x3   :  { %s575_s17 = smov 0   ;;  %s577_s18 = smov 0  }
   0x4 LB: > { %s592_s19 = sadd.s32 4294967295, %s540_s18   ;;  %s373_s20 = sadd.s32 4294967294, %s540_s18   ;;  %s540_s18 = sphi %s577_s18, %s696_s18   ;;  %s536_s17 = sphi %s575_s17, %s695_s17   ;;  %s532_s16 = sphi %s573_s16, %s694_s16   ;;  %s528_s15 = sphi %s571_s15, %s693_s15  }
   0x5   : > { %s596_s21 = sadd.s32 1, %s540_s18   ;;  %s99_s22 = sadd.s32 1, %s536_s17 }
   0x6   : > { %s96_s23 = ssub.s32 %s540_s18, %s596_s21  ;;  %p109_p0 = scmp.ne.s32.totalorder %s536_s17, %s532_s16 }
   0x7   : > { %p97_p1 = scmp.eq.s32.totalorder %s96_s23, 0  ;;  %p110_p2 = scmp.eq.s32.totalorder %s592_s19, 1 }
   0x8   : > { %p115_p3 = scmp.ne.s32.totalorder %s532_s16, %s528_s15  ;;  %p116_p4 = scmp.eq.s32.totalorder %s373_s20, 1 }
   0x9   : > { %s607_s24 = scalar_select %p97_p1, %s536_s17, %s99_s22  }
   0xa   : > { %p611_p5 = por %p110_p2, %p109_p0  ;;  %p615_p6 = por %p116_p4, %p115_p3 }
   0xb   : > { %p376_p7 = scmp.ge.s32.totalorder %s540_s18, 1  ;;  %p172_p8 = scmp.lt.s32.totalorder %s540_s18, 3 }
   0xd   : > { %p173_p9 = pnand %p376_p7, %p172_p8 }
   0xe   : > { %s196_s27 = sand.u32 (!%p173_p9), 1, %s532_s16   ;;  %p201_p10 = scmp.lt.s32.totalorder (!%p173_p9), %s592_s19, 1 }
   0xf   : > { %176 = sbr.rel (%p173_p9) target bundleno = 481 (0x1e1), region = 32  ;;  %s625_s28 = sshll.u32 (!%p173_p9), %s196_s27, 3 }
  0x10   : > { %s198_s11 = scalar_lea.vmem (!%p173_p9), [#allocation3], %s625_s28  ;;  %p380_p11 = scmp.ne.s32.totalorder (!%p173_p9), %s592_s19, 0 }
  0x14   : > { %s202_s29 = scalar_select %p201_p10, %s592_s19, 1 }
  0x15   : > { %212 = sbr.rel (%p380_p11) target bundleno = 28 (0x1c), region = 36 }
  0x16   : > { %s378_s30 = sshll.u32 %s202_s29, 3 }
  0x17   : > { %s204_s7 = scalar_lea.vmem %s686_s0, %s378_s30  ;;  %s208_s10 = scalar_lea.vmem %s687_s1, %s378_s30 }
  0x1a   : > { %vm213_vm0 = vcmask 7168   ;;  %v542_v0 = vmov 0.0  }
  0x1b   : > { %214 = vst.msk [vmem:[#allocation2] sm:$0xff] %vm213_vm0, %v542_v0 }
  0x1c PF: > { %v216_v1 = vld [vmem:[%s688_s2] sm:$0xff]  ;;  %v543_v2 = vmov 0   ;;  %vm233_vm1 = vcmask 7168   ;;  %p381_p12 = scmp.ne.s32.totalorder %s592_s19, 1 }
  0x1d   : > { %441 = vset.pattern.permute.xlu0 %v543_v2  ;;  %v215_v3 = vld [vmem:[%s204_s7] sm:$0xff] }
  0x1e   : > { %219 = vperm.xlu0 %441, %v216_v1   ;;  %v227_v5 = vld [vmem:[%s208_s10] sm:$0xff] }
  0x22   : > { %v226_v10 = vld [vmem:[#allocation2] sm:$0xff] }
  0x90   : > { %v220_v4 = vpop.permute.xlu0 %219 }
  0x91   : > { %v222_v6 = vsub.f32 %v215_v3, %v220_v4 }
  0x93   : > { %v223_v7 = vmul.f32 1.442695, %v222_v6  ;;  %v228_v8 = vmul.f32 %v227_v5, %v222_v6 }
  0x95   : > { %442 = vpow2.f32 %v223_v7  ;;  %229 = vadd.xlane.f32.xlu0 %v228_v8 }
  0x9b   : > { %v443_v9 = vpop.eup %442 }
  0x9c   : > { %225 = vst [vmem:[%s198_s11] sm:$0xff] %v443_v9 }
 0x108   : > { %v230_v11 = vpop.xlane.xlu0 %229 }
 0x109   : > { %v231_v12 = vsub.f32 0.0, %v230_v11  ;;  %238 = sbr.rel (%p381_p12) target bundleno = 461 (0x1cd), region = 40 }
 0x10b   : > { %v232_v13 = vadd.f32 %v231_v12, %v226_v10 }
 0x10d   : > { %234 = vst.msk [vmem:[#allocation2] sm:$0xff] %vm233_vm1, %v232_v13 }
 0x10e   : > { %v544_v16 = vmov 8.0   ;;  %vm260_vm3 = vcmask 0  }
 0x10f   : > { %444 = vrcp.f32 %v544_v16 }
 0x114   : > { %v239_v14 = vld [vmem:[#allocation2] sm:$0xff] }
 0x115   : > { %v240_v15 = vsel %vm233_vm1, %v239_v14, 0.0  ;;  %v445_v17 = vpop.eup %444 }
 0x116   : > { %241 = vadd.xlane.f32.xlu0 %v240_v15  ;;  %v251_v18 = vmul.f32 8.0, %v445_v17  ;;  %vm255_vm2 = vweird.f32 %v445_v17 }
 0x118   : > { %v252_v19 = vsub.f32 1.0, %v251_v18 }
 0x11a   : > { %v253_v23 = vmul.f32 %v445_v17, %v252_v19 }
 0x11c   : > { %v254_v26 = vadd.f32 %v445_v17, %v253_v23 }
 0x11e   : > { %v256_v29 = vsel %vm255_vm2, %v445_v17, %v254_v26 }
 0x189   : > { %v242_v20 = vpop.xlane.xlu0 %241 }
 0x18a   : > { %v243_v21 = vrot.slane %v242_v20, 4 }
 0x18c   : > { %v244_v22 = vadd.f32 %v243_v21, %v242_v20 }
 0x18e   : > { %v245_v24 = vrot.slane %v244_v22, 2 }
 0x190   : > { %v246_v25 = vadd.f32 %v245_v24, %v244_v22 }
 0x192   : > { %v247_v27 = vrot.slane %v246_v25, 1 }
 0x194   : > { %v248_v28 = vadd.f32 %v247_v27, %v246_v25 }
 0x196   : > { %388 = vpush %v248_v28 }
 0x197   : > { %390 = vpush %v256_v29 }
 0x1c7   : > { %s389_s14 = spop %388 }
 0x1c8   : > { %s391_s20 = spop %390 }
 0x1c9   : > { %s258_s22 = smul.f32 %s391_s20, %s389_s14 }
 0x1cb   : > { %v259_v30 = vstv %s258_s22 }
 0x1cc   : > { %261 = vst.msk [vmem:[#allocation5] sm:$0x1] %vm260_vm3, %v259_v30 }
 0x1cd PF: > { %s383_s23 = sshll.u32 %s592_s19, 3  ;;  %s275_s6 = sshll.u32 %s198_s11, 4  ;;  %s276_s6 = int_to_ptr.vmem [resolvable:$true] %s275_s6 }
 0x1ce   : > { %s273_s5 = scalar_lea.hbm %s689_s3, %s383_s23  ;;  %s263_s8 = scalar_lea.sflag [#allocation4], %s196_s27 }
 0x1cf   : > { %s277_s7 = sshll.u32 %s273_s5, 4  ;;  %s466_s14 = scalar_lea.hbm %s689_s3, 16  ;;  %s278_s7 = int_to_ptr.hbm [resolvable:$true] %s277_s7 }
 0x1d0   : > { %s460_s9 = sshra.s32 %s278_s7, 4  ;;  %s461_s9 = int_to_ptr.hbm [resolvable:$true] %s460_s9 }
 0x1d1   : > { %s462_s10 = scalar_lea.hbm %s461_s9, 8  ;;  %p467_p3 = scmp.lt.s32.totalorder %s461_s9, %s689_s3 }
 0x1d2   : > { %p463_p13 = scmp.ne.s32.totalorder %s461_s9, %s462_s10  ;;  %p468_p4 = scmp.lt.s32.totalorder %s466_s14, %s462_s10 }
 0x1d4   : > { %p464_p0 = pnand %p463_p13, %p611_p5  ;;  %p469_p7 = por %p468_p4, %p467_p3 }
 0x1d6   : > { %p465_p1 = pneg %p464_p0 }
 0x1d8   : > { %p470_p8 = pnand %p469_p7, %p465_p1 }
 0x1da   : > { %473 = shalt.err (!%p470_p8)
}
 0x1db   : > { %392 = dma.vmem_to_hbm [thread:$0]  (%p611_p5), %s276_s6, 128, %s278_s7, %s263_s8  }
 0x1dc   : > { %s545_s27 = smov [#allocation5]   ;;  %s289_s29 = sshll.u32 %s690_s4, 4  ;;  %s290_s29 = int_to_ptr.hbm [resolvable:$true] %s289_s29 }
 0x1dd   : > { %s287_s28 = sshll.u32 %s545_s27, 4  ;;  %s288_s28 = int_to_ptr.vmem [resolvable:$true] %s287_s28 }
 0x1de   : > { %394 = dma.vmem_to_hbm [thread:$0]  (%p110_p2), %s288_s28, 16, %s290_s29, [#allocation6]  }
 0x1df   : > { %519 = dma.done.wait (%p110_p2), [#allocation6], 16  }
 0x1e0   : > { %521 = vsyncadd (%p110_p2), [#allocation6], 4294967280 }
 0x1e1 PF: > { %p404_p5 = scmp.ge.s32.totalorder %s540_s18, 2  ;;  %s306_s25 = sand.u32 1, %s528_s15  }
 0x1e2   : > { %s307_s30 = scalar_lea.sflag [#allocation4], %s306_s25 }
 0x1e3   : > { %p399_p9 = pnand %p404_p5, %p615_p6 }
 0x1e5   : > { %p400_p10 = pneg %p399_p9 }
 0x1e7   : > { %523 = dma.done.wait (%p400_p10), %s307_s30, 128  }
 0x1e8   : > { %525 = vsyncadd (%p400_p10), %s307_s30, 4294967168  ;;  %p16_p11 = scmp.ge.s32.totalorder %s596_s21, 4   ;;  %s693_s15 = smov %s532_s16 }
 0x1e9   : > { %s694_s16 = smov %s536_s17  ;;  %s695_s17 = smov %s607_s24 }
 0x1ea   : > { %s696_s18 = smov %s596_s21  ;;  %18 = sbr.rel (!%p16_p11) target bundleno = 4 (0x4), region = 86 }
 0x1ef   :  { %313 = vsyncpa [#allocation4], 1 }
 0x1f0   :  { %315 = vsyncpa [#allocation4 + $0x1], 1 }
 0x1f1   :  { %316 = vsyncpa [#allocation6], 1 }

// kernel: prodlda_forward.4
= control target key start
LH: loop header
LB: loop body
LE: loop exit
PB: predicated region body
PF: predicated region fallthrough
CT: control target
= control target key end

     0   :  { %17 = vsyncpa [#allocation4], 0  ;;  %s1208_s17 = smov 0   ;;  %s1321_s0 = inlined_call_operand.vmem [shape: f32[8,256], index: 0, kind: input, shape index: {}]   ;;  %s1322_s1 = inlined_call_operand.vmem [shape: bf16[256,128], index: 1, kind: input, shape index: {}]   ;;  %s1323_s2 = inlined_call_operand.vmem [shape: f32[1,128], index: 2, kind: input, shape index: {}]   ;;  %s1324_s3 = inlined_call_operand.vmem [shape: bf16[128,128], index: 3, kind: input, shape index: {}]   ;;  %s1325_s4 = inlined_call_operand.vmem [shape: f32[1,128], index: 4, kind: input, shape index: {}]   ;;  %s1326_s5 = inlined_call_operand.vmem [shape: bf16[128,128], index: 5, kind: input, shape index: {}]   ;;  %s1327_s6 = inlined_call_operand.vmem [shape: f32[1,128], index: 6, kind: input, shape index: {}]   ;;  %s1328_s7 = inlined_call_operand.vmem [shape: f32[1,128], index: 7, kind: input, shape index: {}]   ;;  %s1329_s8 = inlined_call_operand.vmem [shape: f32[1,128], index: 8, kind: input, shape index: {}]   ;;  %s1330_s9 = inlined_call_operand.vmem [shape: f32[8,128], index: 9, kind: input, shape index: {}]   ;;  %s1331_s10 = inlined_call_operand.vmem [shape: f32[8,128], index: 10, kind: output, shape index: {0}]   ;;  %s1332_s11 = inlined_call_operand.hbm [shape: f32[1,1], index: 11, kind: output, shape index: {1}]  }
   0x1 LB: > { %s1214_s18 = sadd.s32 4294967295, %s1142_s17   ;;  %p919_p0 = scmp.ge.s32.totalorder %s1142_s17, 1  ;;  %s1142_s17 = sphi %s1208_s17, %s23_s17  }
   0x2   : > { %p341_p1 = scmp.lt.s32.totalorder %s1142_s17, 3 }
   0x4   : > { %p342_p2 = pnand %p919_p0, %p341_p1 }
   0x5   : > { %p380_p3 = scmp.lt.s32.totalorder (!%p342_p2), %s1214_s18, 1  ;;  %s921_s19 = sshll.u32 (!%p342_p2), %s1214_s18, 4 }
   0x6   : > { %345 = sbr.rel (%p342_p2) target bundleno = 1022 (0x3fe), region = 60  ;;  %p385_p4 = scmp.lt.s32.totalorder (!%p342_p2), %s921_s19, 31 }
   0x7   : > { %p923_p5 = scmp.ne.s32.totalorder (!%p342_p2), %s1214_s18, 0 }
   0xb   : > { %s381_s20 = scalar_select %p380_p3, %s1214_s18, 1 }
   0xc   : > { %s1334_s19 = smov (!%p385_p4, %s921_s19), 31  ;;  %393 = sbr.rel (%p923_p5) target bundleno = 19 (0x13), region = 64 }
   0xd   : > { %s920_s21 = sshll.u32 %s381_s20, 3  ;;  %s922_s25 = sshll.u32 %s1334_s19, 2 }
   0xe   : > { %s383_s24 = scalar_lea.vmem %s1321_s0, %s920_s21  ;;  %s388_s28 = scalar_lea.vmem %s1322_s1, %s922_s25 }
  0x11   : > { %v1144_v0 = vmov 0.0  }
  0x12   : > { %394 = vst [vmem:[#allocation2] sm:$0xff] %v1144_v0 }
  0x13 PF: > { %v1033_v1 = vld [vmem:[%s388_s28 + $0x38] sm:$0xff]  ;;  %v1032_v2 = vld [vmem:[%s388_s28 + $0x30] sm:$0xff]  ;;  %v1031_v3 = vld [vmem:[%s388_s28 + $0x28] sm:$0xff]  ;;  %p956_p6 = scmp.ne.s32.totalorder %s1214_s18, 1 }
  0x14   : > { %462 = vmatpush.bf16.msra.mxu0 %v1033_v1  ;;  %v1030_v4 = vld [vmem:[%s388_s28 + $0x20] sm:$0xff]  ;;  %v1029_v5 = vld [vmem:[%s388_s28 + $0x18] sm:$0xff]  ;;  %v1028_v6 = vld [vmem:[%s388_s28 + $0x10] sm:$0xff]  ;;  %s1146_s16 = smov (!%p956_p6), 64  }
  0x15   : > { %v1027_v7 = vld [vmem:[%s388_s28 + $0x8] sm:$0xff]  ;;  %v1026_v8 = vld [vmem:[%s388_s28] sm:$0xff] }
  0x16   : > { %v396_v9 = vld [vmem:[%s383_s24] sm:$0xff] }
  0x17   : > { %v397_v10 = vpack.c.bf16 %v396_v9, %v396_v9 }
  0x18   : > { %463 = vmatpush.bf16.msra.mxu0 %v1032_v2 }
  0x19   : > { %v395_v11 = vld [vmem:[#allocation2] sm:$0xff] }
  0x1c   : > { %464 = vmatpush.bf16.msra.mxu0 %v1031_v3 }
  0x20   : > { %465 = vmatpush.bf16.msra.mxu0 %v1030_v4 }
  0x24   : > { %466 = vmatpush.bf16.msra.mxu0 %v1029_v5 }
  0x28   : > { %467 = vmatpush.bf16.msra.mxu0 %v1028_v6 }
  0x2c   : > { %468 = vmatpush.bf16.msra.mxu0 %v1027_v7 }
  0x30   : > { %469 = vmatpush.bf16.msra.mxu0 %v1026_v8 }
  0x33   : > { %470 = vmatmul.bf16.vlgmr.msra.gmra.mxu0 %v397_v10 }
  0xb0   : > { %v471_v12 = vpop.f32.mrf.mxu0 }
  0xb1   : > { %v475_v13 = vadd.f32 %v471_v12, %v395_v11 }
  0xb3   : > { %476 = vst [vmem:[#allocation2] sm:$0xff] %v475_v13 }
  0xb4   : > { %480 = sbr.rel (%p956_p6) target bundleno = 1017 (0x3f9), region = 68 }
  0xb8   : > { %v473_v14 = vpop.f32.mrf.mxu0 }
  0xb9   : > { %v1041_v15 = vld [vmem:[%s1324_s3 + $0x38] sm:$0xff]  ;;  %v1040_v16 = vld [vmem:[%s1324_s3 + $0x30] sm:$0xff]  ;;  %v1072_v18 = vld [vmem:[%s1323_s2] ss:$0 sm:$0xff]  ;;  %v730_v13 = vlaneseq  ;;  %vm816_vm7 = vcmask 1040384  }
  0xba   : > { %570 = vmatpush.bf16.msra.mxu0 %v1041_v15  ;;  %v481_v17 = vld [vmem:[#allocation2] sm:$0xff]  ;;  %v1049_v19 = vld [vmem:[%s1326_s5 + $0x38] sm:$0xff]  ;;  %v1039_v21 = vld [vmem:[%s1324_s3 + $0x28] sm:$0xff] }
  0xbb   : > { %v486_v20 = vadd.f32 %v1072_v18, %v481_v17  ;;  %666 = vmatpush.bf16.msra.mxu1 %v1049_v19  ;;  %v1038_v24 = vld [vmem:[%s1324_s3 + $0x20] sm:$0xff]  ;;  %v1037_v25 = vld [vmem:[%s1324_s3 + $0x18] sm:$0xff]  ;;  %v1036_v27 = vld [vmem:[%s1324_s3 + $0x10] sm:$0xff]  ;;  %v1289_v15 = vand.u32 127, %v730_v13  ;;  %v1145_v19 = vmov 8.0  }
  0xbc   : > { %v1035_v31 = vld [vmem:[%s1324_s3 + $0x8] sm:$0xff]  ;;  %v1034_v35 = vld [vmem:[%s1324_s3] sm:$0xff]  ;;  %v1048_v40 = vld [vmem:[%s1326_s5 + $0x30] sm:$0xff] }
  0xbd   : > { %v488_v22 = vmin.f32 %v486_v20, 20.0  ;;  %vm487_vm1 = vcmp.gt.f32.partialorder %v486_v20, 20.0  ;;  %v1047_v41 = vld [vmem:[%s1326_s5 + $0x28] sm:$0xff]  ;;  %v1046_v42 = vld [vmem:[%s1326_s5 + $0x20] sm:$0xff]  ;;  %v1045_v43 = vld [vmem:[%s1326_s5 + $0x18] sm:$0xff]  ;;  %vm732_vm6 = vcmp.lt.s32.totalorder %v1289_v15, 64 }
  0xbe   : > { %571 = vmatpush.bf16.msra.mxu0 %v1040_v16  ;;  %v1044_v44 = vld [vmem:[%s1326_s5 + $0x10] sm:$0xff]  ;;  %v1043_v45 = vld [vmem:[%s1326_s5 + $0x8] sm:$0xff]  ;;  %v1042_v46 = vld [vmem:[%s1326_s5] sm:$0xff]  ;;  %vm733_vm15 = vcmp.ge.s32.totalorder %v1289_v15, 64 }
  0xbf   : > { %v489_v23 = vmul.f32 1.442695, %v488_v22  ;;  %667 = vmatpush.bf16.msra.mxu1 %v1048_v40  ;;  %v1073_v47 = vld [vmem:[%s1325_s4] ss:$0 sm:$0xff] }
  0xc0   : > { %v766_v0 = vld [vmem:[%s1329_s8] sm:$0x1] }
  0xc1   : > { %1076 = vpow2.f32 %v489_v23  ;;  %v768_v1 = vmin.f32 %v766_v0, 20.0  ;;  %vm767_vm5 = vcmp.gt.f32.partialorder %v766_v0, 20.0  ;;  %v1074_v22 = vld [vmem:[%s1327_s6] ss:$0 sm:$0xff] }
  0xc2   : > { %572 = vmatpush.bf16.msra.mxu0 %v1039_v21 }
  0xc3   : > { %668 = vmatpush.bf16.msra.mxu1 %v1047_v41  ;;  %v769_v2 = vmul.f32 1.442695, %v768_v1 }
  0xc6   : > { %573 = vmatpush.bf16.msra.mxu0 %v1038_v24 }
  0xc7   : > { %v1077_v26 = vpop.eup %1076  ;;  %669 = vmatpush.bf16.msra.mxu1 %v1046_v42 }
  0xc8   : > { %v491_v28 = vadd.f32 1.0, %v1077_v26  ;;  %v494_v29 = vmul.f32 -0.5, %v1077_v26  ;;  %v497_v32 = vand.u32 2147483647, %v1077_v26 }
  0xca   : > { %574 = vmatpush.bf16.msra.mxu0 %v1037_v25  ;;  %1078 = vlog2.f32 %v491_v28  ;;  %v495_v30 = vadd.f32 1.0, %v494_v29  ;;  %vm498_vm0 = vcmp.lt.f32.partialorder %v497_v32, 0.0004427343 }
  0xcb   : > { %670 = vmatpush.bf16.msra.mxu1 %v1045_v43 }
  0xcc   : > { %v496_v33 = vmul.f32 %v1077_v26, %v495_v30 }
  0xce   : > { %575 = vmatpush.bf16.msra.mxu0 %v1036_v27 }
  0xcf   : > { %671 = vmatpush.bf16.msra.mxu1 %v1044_v44 }
  0xd0   : > { %v1079_v34 = vpop.eup %1078 }
  0xd1   : > { %v493_v36 = vmul.f32 0.6931472, %v1079_v34 }
  0xd2   : > { %576 = vmatpush.bf16.msra.mxu0 %v1035_v31 }
  0xd3   : > { %v499_v37 = vsel %vm498_vm0, %v496_v33, %v493_v36  ;;  %672 = vmatpush.bf16.msra.mxu1 %v1043_v45 }
  0xd4   : > { %v500_v38 = vsel %vm487_vm1, %v486_v20, %v499_v37 }
  0xd5   : > { %v501_v39 = vpack.c.bf16 %v500_v38, %v500_v38 }
  0xd6   : > { %577 = vmatpush.bf16.msra.mxu0 %v1034_v35 }
  0xd7   : > { %673 = vmatpush.bf16.msra.mxu1 %v1042_v46 }
  0xd9   : > { %578 = vmatmul.bf16.vlgmr.msra.gmra.mxu0 %v501_v39 }
 0x156   : > { %v579_v48 = vpop.f32.mrf.mxu0 }
 0x157   : > { %v580_v49 = vadd.f32 %v1073_v47, %v579_v48 }
 0x159   : > { %v584_v50 = vmin.f32 %v580_v49, 20.0  ;;  %vm583_vm3 = vcmp.gt.f32.partialorder %v580_v49, 20.0 }
 0x15b   : > { %v585_v51 = vmul.f32 1.442695, %v584_v50 }
 0x15d   : > { %1080 = vpow2.f32 %v585_v51 }
 0x15e   : > { %v581_v52 = vpop.f32.mrf.mxu0 }
 0x163   : > { %v1081_v53 = vpop.eup %1080 }
 0x164   : > { %v587_v54 = vadd.f32 1.0, %v1081_v53  ;;  %v590_v55 = vmul.f32 -0.5, %v1081_v53  ;;  %v593_v57 = vand.u32 2147483647, %v1081_v53 }
 0x166   : > { %1082 = vlog2.f32 %v587_v54  ;;  %v591_v56 = vadd.f32 1.0, %v590_v55  ;;  %vm594_vm2 = vcmp.lt.f32.partialorder %v593_v57, 0.0004427343 }
 0x167   : > { %1084 = vpow2.f32 %v769_v2 }
 0x168   : > { %v592_v60 = vmul.f32 %v1081_v53, %v591_v56 }
 0x16c   : > { %v1083_v58 = vpop.eup %1082 }
 0x16d   : > { %v589_v59 = vmul.f32 0.6931472, %v1083_v58  ;;  %v1085_v3 = vpop.eup %1084 }
 0x16e   : > { %v771_v4 = vadd.f32 1.0, %v1085_v3  ;;  %v774_v5 = vmul.f32 -0.5, %v1085_v3  ;;  %v777_v8 = vand.u32 2147483647, %v1085_v3 }
 0x16f   : > { %v595_v61 = vsel %vm594_vm2, %v592_v60, %v589_v59 }
 0x170   : > { %v596_v62 = vsel %vm583_vm3, %v580_v49, %v595_v61  ;;  %1086 = vlog2.f32 %v771_v4  ;;  %v775_v6 = vadd.f32 1.0, %v774_v5  ;;  %vm778_vm4 = vcmp.lt.f32.partialorder %v777_v8, 0.0004427343 }
 0x171   : > { %v597_v63 = vpack.c.bf16 %v596_v62, %v596_v62 }
 0x172   : > { %v776_v10 = vmul.f32 %v1085_v3, %v775_v6 }
 0x173   : > { %674 = vmatmul.bf16.vlgmr.msra.gmra.mxu1 %v597_v63 }
 0x176   : > { %v1087_v7 = vpop.eup %1086 }
 0x177   : > { %v773_v9 = vmul.f32 0.6931472, %v1087_v7 }
 0x179   : > { %v779_v11 = vsel %vm778_vm4, %v776_v10, %v773_v9  ;;  %vm836_vm4 = vcmask 7168  }
 0x17a   : > { %v1286_v12 = vsel %vm767_vm5, %v766_v0, %v779_v11 }
 0x17b   : > { %1088 = vlog2.f32 %v1286_v12  ;;  %v783_v13 = vperm.slane %v1286_v12, 0 }
 0x17c   : > { %1090 = vrcp.f32 %v1145_v19 }
 0x17d   : > { %vm790_vm0 = vweird.f32 %v783_v13 }
 0x181   : > { %v1089_v14 = vpop.eup %1088 }
 0x182   : > { %v814_v16 = vmul.f32 0.6931472, %v1089_v14  ;;  %v1091_v20 = vpop.eup %1090 }
 0x183   : > { %v686_v21 = vmul.f32 8.0, %v1091_v20  ;;  %vm690_vm8 = vweird.f32 %v1091_v20 }
 0x184   : > { %v815_v17 = vsel %vm732_vm6, %v814_v16, 0.0 }
 0x185   : > { %v817_v18 = vsel %vm816_vm7, %v815_v17, 0.0  ;;  %v687_v24 = vsub.f32 1.0, %v686_v21 }
 0x186   : > { %818 = vadd.xlane.f32.xlu0 %v817_v18 }
 0x187   : > { %v688_v27 = vmul.f32 %v1091_v20, %v687_v24  ;;  %v794_v24 = vand.u32 2147483647, %v783_v13 }
 0x189   : > { %v689_v30 = vadd.f32 %v1091_v20, %v688_v27  ;;  %vm795_vm3 = vcmp.eq.f32.partialorder %v794_v24, 8.507059e+37 }
 0x18b   : > { %v691_v34 = vsel %vm690_vm8, %v1091_v20, %v689_v30 }
 0x1f0   : > { %v675_v23 = vpop.f32.mrf.mxu1 }
 0x1f1   : > { %v676_v25 = vadd.f32 %v1074_v22, %v675_v23  ;;  %v796_v22 = vand.u32 2147483648, %v783_v13 }
 0x1f3   : > { %v679_v26 = vrot.slane %v676_v25, 4  ;;  %v797_v12 = vor.u32 1.1754944e-38, %v796_v22 }
 0x1f5   : > { %v680_v28 = vadd.f32 %v679_v26, %v676_v25  ;;  %v739_v26 = vld [vmem:[%s1330_s9] sm:$0xff] }
 0x1f7   : > { %v681_v29 = vrot.slane %v680_v28, 2 }
 0x1f8   : > { %v677_v31 = vpop.f32.mrf.mxu1 }
 0x1f9   : > { %v682_v32 = vadd.f32 %v681_v29, %v680_v28  ;;  %v819_v5 = vpop.xlane.xlu0 %818 }
 0x1fa   : > { %v820_v6 = vrot.slane %v819_v5, 4 }
 0x1fb   : > { %v683_v33 = vrot.slane %v682_v32, 1 }
 0x1fc   : > { %v821_v7 = vadd.f32 %v820_v6, %v819_v5 }
 0x1fd   : > { %v684_v35 = vadd.f32 %v683_v33, %v682_v32 }
 0x1fe   : > { %v822_v8 = vrot.slane %v821_v7, 2 }
 0x1ff   : > { %v692_v36 = vmul.f32 %v691_v34, %v684_v35 }
 0x200   : > { %v823_v9 = vadd.f32 %v822_v8, %v821_v7 }
 0x201   : > { %v693_v37 = vsub.f32 %v676_v25, %v692_v36  ;;  %v1075_v25 = vld [vmem:[%s1328_s7] ss:$0 sm:$0xff] }
 0x202   : > { %v824_v10 = vrot.slane %v823_v9, 1 }
 0x203   : > { %v694_v38 = vmul.f32 %v693_v37, %v693_v37 }
 0x204   : > { %v825_v11 = vadd.f32 %v824_v10, %v823_v9 }
 0x205   : > { %v695_v39 = vrot.slane %v694_v38, 4 }
 0x206   : > { %1050 = vpush %v825_v11 }
 0x207   : > { %v696_v40 = vadd.f32 %v695_v39, %v694_v38 }
 0x209   : > { %v697_v41 = vrot.slane %v696_v40, 2 }
 0x20b   : > { %v698_v42 = vadd.f32 %v697_v41, %v696_v40 }
 0x20d   : > { %v699_v43 = vrot.slane %v698_v42, 1 }
 0x20f   : > { %v700_v44 = vadd.f32 %v699_v43, %v698_v42 }
 0x211   : > { %v701_v45 = vmul.f32 %v700_v44, %v691_v34 }
 0x213   : > { %v702_v46 = vadd.f32 1e-05, %v701_v45 }
 0x215   : > { %1092 = vrsqrt.f32 %v702_v46  ;;  %vm710_vm9 = vcmp.eq.f32.partialorder %v702_v46, inf  ;;  %v713_v54 = vand.u32 2147483648, %v702_v46  ;;  %vm712_vm10 = vcmp.eq.f32.partialorder %v702_v46, 0.0 }
 0x21b   : > { %v1093_v47 = vpop.eup %1092 }
 0x21c   : > { %v704_v48 = vmul.f32 %v1093_v47, %v702_v46 }
 0x21e   : > { %v705_v49 = vmul.f32 %v1093_v47, %v704_v48 }
 0x220   : > { %v706_v50 = vmul.f32 0.5, %v705_v49 }
 0x222   : > { %v707_v51 = vsub.f32 1.5, %v706_v50 }
 0x224   : > { %v708_v52 = vmul.f32 %v1093_v47, %v707_v51 }
 0x226   : > { %v709_v53 = vmul.f32 %v708_v52, %v702_v46 }
 0x228   : > { %v711_v55 = vsel %vm710_vm9, %v702_v46, %v709_v53  ;;  %vm848_vm9 = vcmask 0  }
 0x229   : > { %v714_v56 = vsel %vm712_vm10, %v713_v54, %v711_v55 }
 0x22a   : > { %1094 = vrcp.f32 %v714_v56  ;;  %v726_v60 = vand.u32 2147483648, %v714_v56  ;;  %v724_v62 = vand.u32 2147483647, %v714_v56  ;;  %vm720_vm12 = vweird.f32 %v714_v56 }
 0x22b   : > { %1096 = vrcp.f32 %v783_v13 }
 0x22c   : > { %v727_v0 = vor.u32 1.1754944e-38, %v726_v60  ;;  %vm725_vm14 = vcmp.eq.f32.partialorder %v724_v62, 8.507059e+37 }
 0x230   : > { %v1095_v57 = vpop.eup %1094 }
 0x231   : > { %v716_v58 = vmul.f32 %v1095_v57, %v714_v56  ;;  %vm721_vm11 = vweird.f32 %v1095_v57  ;;  %v1097_v14 = vpop.eup %1096 }
 0x232   : > { %vm722_vm13 = vmor %vm720_vm12, %vm721_vm11  ;;  %v786_v16 = vmul.f32 %v1097_v14, %v783_v13  ;;  %vm791_vm1 = vweird.f32 %v1097_v14 }
 0x233   : > { %v717_v59 = vsub.f32 1.0, %v716_v58  ;;  %vm792_vm2 = vmor %vm790_vm0, %vm791_vm1 }
 0x234   : > { %v787_v17 = vsub.f32 1.0, %v786_v16 }
 0x235   : > { %v718_v61 = vmul.f32 %v1095_v57, %v717_v59 }
 0x236   : > { %v788_v20 = vmul.f32 %v1097_v14, %v787_v17 }
 0x237   : > { %v719_v63 = vadd.f32 %v1095_v57, %v718_v61  ;;  %s1051_s23 = spop %1050 }
 0x238   : > { %v789_v23 = vadd.f32 %v1097_v14, %v788_v20  ;;  %v832_v45 = vstv %s1051_s23 }
 0x239   : > { %v723_v1 = vsel %vm722_vm13, %v1095_v57, %v719_v63 }
 0x23a   : > { %v728_v2 = vsel %vm725_vm14, %v727_v0, %v723_v1  ;;  %v793_v27 = vsel %vm792_vm2, %v1097_v14, %v789_v23 }
 0x23b   : > { %v729_v3 = vmul.f32 %v728_v2, %v693_v37  ;;  %v798_v32 = vsel %vm795_vm3, %v797_v12, %v793_v27 }
 0x23d   : > { %734 = vrot.lane.b32.xlu0 %v729_v3, %s1146_s16  ;;  %v827_v4 = vsel %vm733_vm15, %v729_v3, 0.0  ;;  %v807_v31 = vsub.f32 %v1075_v25, %v729_v3 }
 0x23e   : > { %828 = vadd.xlane.f32.xlu2 %v827_v4 }
 0x23f   : > { %v808_v37 = vmul.f32 %v807_v31, %v807_v31 }
 0x241   : > { %v809_v38 = vmul.f32 %v808_v37, %v798_v32 }
 0x243   : > { %v810_v39 = vsel %vm732_vm6, %v809_v38, 0.0 }
 0x2af   : > { %v735_v18 = vpop.permute.xlu0 %734 }
 0x2b0   : > { %v736_v19 = vmul.f32 0.5, %v735_v18 }
 0x2b1   : > { %v829_v40 = vpop.xlane.xlu2 %828 }
 0x2b2   : > { %v737_v21 = vmul.f32 1.442695, %v736_v19  ;;  %v833_v49 = vsub.f32 %v832_v45, %v829_v40 }
 0x2b4   : > { %1098 = vpow2.f32 %v737_v21 }
 0x2ba   : > { %v1099_v28 = vpop.eup %1098 }
 0x2bb   : > { %v781_v29 = vmul.f32 %v1099_v28, %v1099_v28  ;;  %v740_v30 = vmul.f32 %v1099_v28, %v739_v26 }
 0x2bd   : > { %v799_v33 = vmul.f32 %v798_v32, %v781_v29  ;;  %v741_v34 = vadd.f32 %v740_v30, %v729_v3 }
 0x2bf   : > { %v800_v35 = vsel %vm732_vm6, %v799_v33, 0.0  ;;  %v742_v36 = vsel %vm732_vm6, %v741_v34, -inf }
 0x2c0   : > { %801 = vadd.xlane.f32.xlu1 %v800_v35  ;;  %743 = vmax.xlane.f32.xlu2 %v742_v36 }
 0x2c8   : > { %811 = vadd.xlane.f32.xlu1 %v810_v39 }
 0x333   : > { %v802_v41 = vpop.xlane.xlu1 %801  ;;  %v744_v42 = vpop.xlane.xlu2 %743 }
 0x334   : > { %v745_v43 = vsub.f32 %v742_v36, %v744_v42 }
 0x336   : > { %v746_v44 = vmul.f32 1.442695, %v745_v43 }
 0x338   : > { %1100 = vpow2.f32 %v746_v44 }
 0x33b   : > { %v812_v46 = vpop.xlane.xlu1 %811 }
 0x33c   : > { %v830_v47 = vadd.f32 %v812_v46, %v802_v41 }
 0x33e   : > { %v1101_v48 = vpop.eup %1100  ;;  %v1021_v50 = vadd.f32 -64.0, %v830_v47 }
 0x33f   : > { %748 = vadd.xlane.f32.xlu2 %v1101_v48 }
 0x340   : > { %v834_v51 = vadd.f32 %v1021_v50, %v833_v49 }
 0x342   : > { %v835_v52 = vmul.f32 0.5, %v834_v51 }
 0x344   : > { %v837_v15 = vsel %vm836_vm4, %v835_v52, 0.0 }
 0x345   : > { %838 = vadd.xlane.f32.xlu1 %v837_v15 }
 0x3b2   : > { %v749_v53 = vpop.xlane.xlu2 %748 }
 0x3b3   : > { %1102 = vrcp.f32 %v749_v53  ;;  %v761_v60 = vand.u32 2147483648, %v749_v53  ;;  %v759_v63 = vand.u32 2147483647, %v749_v53  ;;  %vm755_vm6 = vweird.f32 %v749_v53 }
 0x3b5   : > { %v762_v2 = vor.u32 1.1754944e-38, %v761_v60  ;;  %vm760_vm8 = vcmp.eq.f32.partialorder %v759_v63, 8.507059e+37 }
 0x3b8   : > { %v839_v54 = vpop.xlane.xlu1 %838 }
 0x3b9   : > { %v1103_v55 = vpop.eup %1102  ;;  %v840_v56 = vrot.slane %v839_v54, 4 }
 0x3ba   : > { %v751_v57 = vmul.f32 %v1103_v55, %v749_v53  ;;  %vm756_vm5 = vweird.f32 %v1103_v55 }
 0x3bb   : > { %v841_v58 = vadd.f32 %v840_v56, %v839_v54  ;;  %vm757_vm7 = vmor %vm755_vm6, %vm756_vm5 }
 0x3bc   : > { %v752_v59 = vsub.f32 1.0, %v751_v57 }
 0x3bd   : > { %v842_v61 = vrot.slane %v841_v58, 2 }
 0x3be   : > { %v753_v62 = vmul.f32 %v1103_v55, %v752_v59 }
 0x3bf   : > { %v843_v0 = vadd.f32 %v842_v61, %v841_v58 }
 0x3c0   : > { %v754_v1 = vadd.f32 %v1103_v55, %v753_v62 }
 0x3c1   : > { %v844_v3 = vrot.slane %v843_v0, 1 }
 0x3c2   : > { %v758_v4 = vsel %vm757_vm7, %v1103_v55, %v754_v1 }
 0x3c3   : > { %v763_v5 = vsel %vm760_vm8, %v762_v2, %v758_v4  ;;  %v845_v6 = vadd.f32 %v844_v3, %v843_v0 }
 0x3c4   : > { %v764_v7 = vmul.f32 %v1101_v48, %v763_v5 }
 0x3c5   : > { %1052 = vpush %v845_v6 }
 0x3c6   : > { %765 = vst [vmem:[%s1331_s10] sm:$0xff] %v764_v7 }
 0x3f6   : > { %s1053_s26 = spop %1052 }
 0x3f7   : > { %v847_v8 = vstv %s1053_s26 }
 0x3f8   : > { %849 = vst.msk [vmem:[#allocation3] sm:$0x1] %vm848_vm9, %v847_v8 }
 0x3f9 PF: > { %p1058_p7 = scmp.eq.s32.totalorder %s1214_s18, 1  ;;  %s1147_s27 = smov [#allocation3]  }
 0x3fa   : > { %s859_s28 = sshll.u32 %s1147_s27, 4  ;;  %s861_s12 = sshll.u32 %s1332_s11, 4  ;;  %s860_s28 = int_to_ptr.vmem [resolvable:$true] %s859_s28  ;;  %s862_s12 = int_to_ptr.hbm [resolvable:$true] %s861_s12 }
 0x3fb   : > { %1055 = dma.vmem_to_hbm [thread:$0]  (%p1058_p7), %s860_s28, 16, %s862_s12, [#allocation4]  }
 0x3fc   : > { %1137 = dma.done.wait (%p1058_p7), [#allocation4], 16  }
 0x3fd   : > { %1139 = vsyncadd (%p1058_p7), [#allocation4], 4294967280 }
 0x3fe PF: > { %s23_s17 = sadd.s32 1, %s1142_s17  }
 0x3ff   : > { %p20_p8 = scmp.ge.s32.totalorder %s23_s17, 4  }
 0x401   :  { %22 = sbr.rel (!%p20_p8) target bundleno = 1 (0x1), region = 106 }
 0x406   :  { %878 = vsyncpa [#allocation4], 1 }
 0x407   :  { %880 = vsyncpa [#allocation4 + $0x1], 1 }

</bundles_post_ra>
